<compile_context>
chip_gen: v5e
topology: v5e:2x2
jax: 0.10.0
libtpu: 0.0.40
codegen_flags: <defaults>
</compile_context>

<pallas_src>
import functools

import jax
import jax.numpy as jnp
from jax import lax
from jax.experimental import pallas as pl
from jax.experimental.pallas import tpu as pltpu


def npunit_kernel(xh_ref, halo_ref, c_ref, w_ref, b_ref, h_out_ref, c_out_ref,
                  *, k, wp, cout, tile, chunk, hb):
    # Hoist the (tiny) weights / combined bias out of the chunk loop.
    w = [w_ref[i] for i in range(k * k)]             # k*k of (4*cout, Ct) bf16
    b = b_ref[...]                                   # (4*cout, 1) f32

    nchunks = tile // chunk
    for j in range(nchunks):
        base = j * chunk
        # Window = this chunk plus its right halo; covers every shifted read.
        if base + chunk + hb <= tile:
            win = xh_ref[:, base:base + chunk + hb]                 # (Ct, chunk+hb)
        else:  # only the last chunk spills into the halo block
            win = jnp.concatenate([xh_ref[:, base:tile], halo_ref[...]], axis=1)

        # Fused conv_x + conv_h as k*k shifted bf16 dots accumulated in f32
        # (on-chip im2col: the patch matrix never exists in HBM).
        acc = jnp.zeros((4 * cout, chunk), jnp.float32)
        for ky in range(k):
            for kx in range(k):
                d = ky * wp + kx                                    # static lane shift
                acc = acc + jnp.dot(w[ky * k + kx], win[:, d:d + chunk],
                                    preferred_element_type=jnp.float32)
        acc = acc + b                                               # bias bx+bh

        # Gate order matches torch.chunk: i, c, f, o (sublane-aligned slices).
        gi = acc[0 * cout:1 * cout]
        gc = acc[1 * cout:2 * cout]
        gf = acc[2 * cout:3 * cout]
        go = acc[3 * cout:4 * cout]

        it = jax.nn.sigmoid(gi)
        ft = jax.nn.sigmoid(gf)
        new_c = ft * c_ref[:, base:base + chunk] + it * jnp.tanh(gc)
        ot = jax.nn.sigmoid(go)

        c_out_ref[:, base:base + chunk] = new_c
        h_out_ref[:, base:base + chunk] = ot * jnp.tanh(new_c)


def _round_up(a, b):
    return (a + b - 1) // b * b


@functools.partial(jax.jit, static_argnames=("kernel_size", "tile_cols"))
def npunit_forward(x, h, c, wx, wh, bx, bh, kernel_size=3, tile_cols=2048):
    """NPUnit forward.
    x:(N,Cin,H,W) h,c:(N,Cout,H,W) wx:(4Cout,Cin,k,k) wh:(4Cout,Cout,k,k)
    bx,bh:(4Cout,).  Returns (new_h, new_c) in NCHW, float32."""
    k = kernel_size
    p = (k - 1) // 2
    n, cin, H, W = x.shape
    cout = h.shape[1]
    ct = cin + cout
    Hp, Wp = H + 2 * p, W + 2 * p
    L = n * Hp * Wp                                  # flattened padded spatial size
    D = (k - 1) * (Wp + 1)                           # largest lane shift used in-kernel
    hb = max(128, _round_up(D, 128))                 # halo block width (lanes)
    B = _round_up(512, hb)                           # in-kernel chunk width (>= hb)
    T = max(B, _round_up(min(tile_cols, L), B))      # main tile width (lanes)
    num_tiles = pl.cdiv(L, T)
    Lm = num_tiles * T                               # padded output length
    La = Lm + T                                      # allocation (room for last halo)
    hb_per_tile = T // hb

    f32 = jnp.float32

    # TODO(synk): accept/return channel-major activations directly to skip the
    # NCHW glue transposes when the surrounding model allows it.
    # Channel-major, spatially padded, flattened activations (bf16 for MXU/BW).
    xh = jnp.concatenate([x, h], axis=1).astype(jnp.bfloat16)      # (N, Ct, H, W)
    xh = jnp.pad(xh, ((0, 0), (0, 0), (p, p), (p, p)))
    xh = jnp.transpose(xh, (1, 0, 2, 3)).reshape(ct, L)
    xh = jnp.pad(xh, ((0, 0), (0, La - L)))

    # Cell state laid out at the same flat anchors (zeros on padded positions).
    cp = jnp.pad(c, ((0, 0), (0, 0), (0, 2 * p), (0, 2 * p)))
    cp = jnp.transpose(cp, (1, 0, 2, 3)).reshape(cout, L).astype(f32)
    cp = jnp.pad(cp, ((0, 0), (0, Lm - L)))

    # Fused weights (k*k, 4Cout, Cin+Cout) bf16 and combined bias (4Cout,1) f32.
    wxh = jnp.concatenate([wx, wh], axis=1)                        # (4Cout, Ct, k, k)
    wf = jnp.transpose(wxh, (2, 3, 0, 1)).reshape(k * k, 4 * cout, ct)
    wf = wf.astype(jnp.bfloat16)
    bf = (bx + bh).astype(f32).reshape(4 * cout, 1)

    kern = functools.partial(npunit_kernel, k=k, wp=Wp, cout=cout,
                             tile=T, chunk=B, hb=hb)

    new_h, new_c = pl.pallas_call(
        kern,
        out_shape=(jax.ShapeDtypeStruct((cout, Lm), f32),
                   jax.ShapeDtypeStruct((cout, Lm), f32)),
        grid=(num_tiles,),
        in_specs=[
            pl.BlockSpec((ct, T), lambda i: (0, i)),                       # main tile
            pl.BlockSpec((ct, hb), lambda i: (0, (i + 1) * hb_per_tile)),  # right halo
            pl.BlockSpec((cout, T), lambda i: (0, i)),                     # cell state
            pl.BlockSpec((k * k, 4 * cout, ct), lambda i: (0, 0, 0)),      # weights
            pl.BlockSpec((4 * cout, 1), lambda i: (0, 0)),                 # bias
        ],
        out_specs=(pl.BlockSpec((cout, T), lambda i: (0, i)),
                   pl.BlockSpec((cout, T), lambda i: (0, i))),
        compiler_params=pltpu.CompilerParams(
            dimension_semantics=("parallel",)),
    )(xh, xh, cp, wf, bf)

    # Back to NCHW (glue): drop padded anchors, then transpose.
    new_h = new_h[:, :L].reshape(cout, n, Hp, Wp)[:, :, :H, :W]
    new_c = new_c[:, :L].reshape(cout, n, Hp, Wp)[:, :, :H, :W]
    return new_h.transpose(1, 0, 2, 3), new_c.transpose(1, 0, 2, 3)


def reference_forward(x, h, c, wx, wh, bx, bh, k):
    """Pure-JAX reference with lax.conv (NCHW/OIHW), matching PyTorch semantics."""
    pad = (k - 1) // 2
    dn = ('NCHW', 'OIHW', 'NCHW')
    xa = lax.conv_general_dilated(x, wx, (1, 1), [(pad, pad), (pad, pad)],
                                  dimension_numbers=dn) + bx[None, :, None, None]
    ha = lax.conv_general_dilated(h, wh, (1, 1), [(pad, pad), (pad, pad)],
                                  dimension_numbers=dn) + bh[None, :, None, None]
    co = c.shape[1]
    xi, xc, xf, xo = [xa[:, j * co:(j + 1) * co] for j in range(4)]
    hi, hc, hf, ho = [ha[:, j * co:(j + 1) * co] for j in range(4)]
    it = jax.nn.sigmoid(xi + hi)
    ft = jax.nn.sigmoid(xf + hf)
    new_c = ft * c + it * jnp.tanh(xc + hc)
    ot = jax.nn.sigmoid(xo + ho)
    return ot * jnp.tanh(new_c), new_c


if __name__ == "__main__":
    n, cin, cout, H, W, k = 2, 4, 8, 16, 16, 3

    key = jax.random.PRNGKey(0)
    ks = jax.random.split(key, 7)
    x = jax.random.normal(ks[0], (n, cin, H, W), jnp.float32)
    h = jax.random.normal(ks[1], (n, cout, H, W), jnp.float32)
    c = jax.random.normal(ks[2], (n, cout, H, W), jnp.float32)
    # Parameters in PyTorch layout: nn.Conv2d weight (out, in, kH, kW) + bias.
    wx = jax.random.normal(ks[3], (4 * cout, cin, k, k), jnp.float32) * 0.1
    wh = jax.random.normal(ks[4], (4 * cout, cout, k, k), jnp.float32) * 0.1
    bx = jax.random.normal(ks[5], (4 * cout,), jnp.float32) * 0.1
    bh = jax.random.normal(ks[6], (4 * cout,), jnp.float32) * 0.1

    new_h, new_c = npunit_forward(x, h, c, wx, wh, bx, bh, kernel_size=k)
    jax.block_until_ready((new_h, new_c))

    ref_h, ref_c = reference_forward(x, h, c, wx, wh, bx, bh, k)
    assert new_h.shape == (n, cout, H, W) and new_c.shape == (n, cout, H, W)
    # bf16 matmul operands -> slightly looser tolerance than the f32 reference.
    assert jnp.allclose(new_h, ref_h, atol=2e-2, rtol=2e-2)
    assert jnp.allclose(new_c, ref_c, atol=2e-2, rtol=2e-2)

    print("KERNEL_OK")
</pallas_src>

<mosaic_0001>
module attributes {stable_mosaic.version = 11 : i64} {
  func.func @npunit_kernel(%arg0: i32, %arg1: memref<12x1024xbf16, #tpu.memory_space<vmem>>, %arg2: memref<12x128xbf16, #tpu.memory_space<vmem>>, %arg3: memref<8x1024xf32, #tpu.memory_space<vmem>>, %arg4: memref<9x32x12xbf16, #tpu.memory_space<vmem>>, %arg5: memref<32x1xf32, #tpu.memory_space<vmem>>, %arg6: memref<8x1024xf32, #tpu.memory_space<vmem>>, %arg7: memref<8x1024xf32, #tpu.memory_space<vmem>>) attributes {dimension_semantics = [#tpu.dimension_semantics<parallel>], iteration_bounds = array<i64: 1>, scalar_prefetch = 0 : i64, scratch_operands = 0 : i64, tpu.core_type = #tpu.core_type<tc>, window_params = [{transform_indices = @transform_0, window_bounds = array<i64: 12, 1024>}, {transform_indices = @transform_1, window_bounds = array<i64: 12, 128>}, {transform_indices = @transform_2, window_bounds = array<i64: 8, 1024>}, {pipeline_mode = #tpu.pipeline_mode<synchronous>, transform_indices = @transform_3, window_bounds = array<i64: 9, 32, 12>}, {pipeline_mode = #tpu.pipeline_mode<synchronous>, transform_indices = @transform_4, window_bounds = array<i64: 32, 1>}, {transform_indices = @transform_5, window_bounds = array<i64: 8, 1024>}, {transform_indices = @transform_6, window_bounds = array<i64: 8, 1024>}]} {
    %c0 = arith.constant 0 : index
    %c0_0 = arith.constant 0 : index
    %c0_1 = arith.constant 0 : index
    %0 = vector.load %arg4[%c0, %c0_0, %c0_1] : memref<9x32x12xbf16, #tpu.memory_space<vmem>>, vector<1x32x12xbf16>
    %1 = vector.shape_cast %0 : vector<1x32x12xbf16> to vector<32x12xbf16>
    %c1 = arith.constant 1 : index
    %c0_2 = arith.constant 0 : index
    %c0_3 = arith.constant 0 : index
    %2 = vector.load %arg4[%c1, %c0_2, %c0_3] : memref<9x32x12xbf16, #tpu.memory_space<vmem>>, vector<1x32x12xbf16>
    %3 = vector.shape_cast %2 : vector<1x32x12xbf16> to vector<32x12xbf16>
    %c2 = arith.constant 2 : index
    %c0_4 = arith.constant 0 : index
    %c0_5 = arith.constant 0 : index
    %4 = vector.load %arg4[%c2, %c0_4, %c0_5] : memref<9x32x12xbf16, #tpu.memory_space<vmem>>, vector<1x32x12xbf16>
    %5 = vector.shape_cast %4 : vector<1x32x12xbf16> to vector<32x12xbf16>
    %c3 = arith.constant 3 : index
    %c0_6 = arith.constant 0 : index
    %c0_7 = arith.constant 0 : index
    %6 = vector.load %arg4[%c3, %c0_6, %c0_7] : memref<9x32x12xbf16, #tpu.memory_space<vmem>>, vector<1x32x12xbf16>
    %7 = vector.shape_cast %6 : vector<1x32x12xbf16> to vector<32x12xbf16>
    %c4 = arith.constant 4 : index
    %c0_8 = arith.constant 0 : index
    %c0_9 = arith.constant 0 : index
    %8 = vector.load %arg4[%c4, %c0_8, %c0_9] : memref<9x32x12xbf16, #tpu.memory_space<vmem>>, vector<1x32x12xbf16>
    %9 = vector.shape_cast %8 : vector<1x32x12xbf16> to vector<32x12xbf16>
    %c5 = arith.constant 5 : index
    %c0_10 = arith.constant 0 : index
    %c0_11 = arith.constant 0 : index
    %10 = vector.load %arg4[%c5, %c0_10, %c0_11] : memref<9x32x12xbf16, #tpu.memory_space<vmem>>, vector<1x32x12xbf16>
    %11 = vector.shape_cast %10 : vector<1x32x12xbf16> to vector<32x12xbf16>
    %c6 = arith.constant 6 : index
    %c0_12 = arith.constant 0 : index
    %c0_13 = arith.constant 0 : index
    %12 = vector.load %arg4[%c6, %c0_12, %c0_13] : memref<9x32x12xbf16, #tpu.memory_space<vmem>>, vector<1x32x12xbf16>
    %13 = vector.shape_cast %12 : vector<1x32x12xbf16> to vector<32x12xbf16>
    %c7 = arith.constant 7 : index
    %c0_14 = arith.constant 0 : index
    %c0_15 = arith.constant 0 : index
    %14 = vector.load %arg4[%c7, %c0_14, %c0_15] : memref<9x32x12xbf16, #tpu.memory_space<vmem>>, vector<1x32x12xbf16>
    %15 = vector.shape_cast %14 : vector<1x32x12xbf16> to vector<32x12xbf16>
    %c8 = arith.constant 8 : index
    %c0_16 = arith.constant 0 : index
    %c0_17 = arith.constant 0 : index
    %16 = vector.load %arg4[%c8, %c0_16, %c0_17] : memref<9x32x12xbf16, #tpu.memory_space<vmem>>, vector<1x32x12xbf16>
    %17 = vector.shape_cast %16 : vector<1x32x12xbf16> to vector<32x12xbf16>
    %c0_18 = arith.constant 0 : index
    %c0_19 = arith.constant 0 : index
    %18 = vector.load %arg5[%c0_18, %c0_19] : memref<32x1xf32, #tpu.memory_space<vmem>>, vector<32x1xf32>
    %c0_20 = arith.constant 0 : index
    %c0_21 = arith.constant 0 : index
    %19 = vector.load %arg1[%c0_20, %c0_21] : memref<12x1024xbf16, #tpu.memory_space<vmem>>, vector<12x640xbf16>
    %cst = arith.constant 0.000000e+00 : f32
    %20 = vector.broadcast %cst : f32 to vector<32x512xf32>
    %21 = vector.extract_strided_slice %19 {offsets = [0, 0], sizes = [12, 512], strides = [1, 1]} : vector<12x640xbf16> to vector<12x512xbf16>
    %cst_22 = arith.constant dense<0.000000e+00> : vector<32x512xf32>
    %22 = tpu.matmul %1, %21, %cst_22 {dimension_numbers = #tpu.dot_dimension_numbers<[1], [0], [0], [1], [0, 0, 1, 1], [], []>} : vector<32x12xbf16>, vector<12x512xbf16>, vector<32x512xf32> -> vector<32x512xf32>
    %23 = arith.addf %20, %22 : vector<32x512xf32>
    %24 = vector.extract_strided_slice %19 {offsets = [0, 1], sizes = [12, 512], strides = [1, 1]} : vector<12x640xbf16> to vector<12x512xbf16>
    %cst_23 = arith.constant dense<0.000000e+00> : vector<32x512xf32>
    %25 = tpu.matmul %3, %24, %cst_23 {dimension_numbers = #tpu.dot_dimension_numbers<[1], [0], [0], [1], [0, 0, 1, 1], [], []>} : vector<32x12xbf16>, vector<12x512xbf16>, vector<32x512xf32> -> vector<32x512xf32>
    %26 = arith.addf %23, %25 : vector<32x512xf32>
    %27 = vector.extract_strided_slice %19 {offsets = [0, 2], sizes = [12, 512], strides = [1, 1]} : vector<12x640xbf16> to vector<12x512xbf16>
    %cst_24 = arith.constant dense<0.000000e+00> : vector<32x512xf32>
    %28 = tpu.matmul %5, %27, %cst_24 {dimension_numbers = #tpu.dot_dimension_numbers<[1], [0], [0], [1], [0, 0, 1, 1], [], []>} : vector<32x12xbf16>, vector<12x512xbf16>, vector<32x512xf32> -> vector<32x512xf32>
    %29 = arith.addf %26, %28 : vector<32x512xf32>
    %30 = vector.extract_strided_slice %19 {offsets = [0, 18], sizes = [12, 512], strides = [1, 1]} : vector<12x640xbf16> to vector<12x512xbf16>
    %cst_25 = arith.constant dense<0.000000e+00> : vector<32x512xf32>
    %31 = tpu.matmul %7, %30, %cst_25 {dimension_numbers = #tpu.dot_dimension_numbers<[1], [0], [0], [1], [0, 0, 1, 1], [], []>} : vector<32x12xbf16>, vector<12x512xbf16>, vector<32x512xf32> -> vector<32x512xf32>
    %32 = arith.addf %29, %31 : vector<32x512xf32>
    %33 = vector.extract_strided_slice %19 {offsets = [0, 19], sizes = [12, 512], strides = [1, 1]} : vector<12x640xbf16> to vector<12x512xbf16>
    %cst_26 = arith.constant dense<0.000000e+00> : vector<32x512xf32>
    %34 = tpu.matmul %9, %33, %cst_26 {dimension_numbers = #tpu.dot_dimension_numbers<[1], [0], [0], [1], [0, 0, 1, 1], [], []>} : vector<32x12xbf16>, vector<12x512xbf16>, vector<32x512xf32> -> vector<32x512xf32>
    %35 = arith.addf %32, %34 : vector<32x512xf32>
    %36 = vector.extract_strided_slice %19 {offsets = [0, 20], sizes = [12, 512], strides = [1, 1]} : vector<12x640xbf16> to vector<12x512xbf16>
    %cst_27 = arith.constant dense<0.000000e+00> : vector<32x512xf32>
    %37 = tpu.matmul %11, %36, %cst_27 {dimension_numbers = #tpu.dot_dimension_numbers<[1], [0], [0], [1], [0, 0, 1, 1], [], []>} : vector<32x12xbf16>, vector<12x512xbf16>, vector<32x512xf32> -> vector<32x512xf32>
    %38 = arith.addf %35, %37 : vector<32x512xf32>
    %39 = vector.extract_strided_slice %19 {offsets = [0, 36], sizes = [12, 512], strides = [1, 1]} : vector<12x640xbf16> to vector<12x512xbf16>
    %cst_28 = arith.constant dense<0.000000e+00> : vector<32x512xf32>
    %40 = tpu.matmul %13, %39, %cst_28 {dimension_numbers = #tpu.dot_dimension_numbers<[1], [0], [0], [1], [0, 0, 1, 1], [], []>} : vector<32x12xbf16>, vector<12x512xbf16>, vector<32x512xf32> -> vector<32x512xf32>
    %41 = arith.addf %38, %40 : vector<32x512xf32>
    %42 = vector.extract_strided_slice %19 {offsets = [0, 37], sizes = [12, 512], strides = [1, 1]} : vector<12x640xbf16> to vector<12x512xbf16>
    %cst_29 = arith.constant dense<0.000000e+00> : vector<32x512xf32>
    %43 = tpu.matmul %15, %42, %cst_29 {dimension_numbers = #tpu.dot_dimension_numbers<[1], [0], [0], [1], [0, 0, 1, 1], [], []>} : vector<32x12xbf16>, vector<12x512xbf16>, vector<32x512xf32> -> vector<32x512xf32>
    %44 = arith.addf %41, %43 : vector<32x512xf32>
    %45 = vector.extract_strided_slice %19 {offsets = [0, 38], sizes = [12, 512], strides = [1, 1]} : vector<12x640xbf16> to vector<12x512xbf16>
    %cst_30 = arith.constant dense<0.000000e+00> : vector<32x512xf32>
    %46 = tpu.matmul %17, %45, %cst_30 {dimension_numbers = #tpu.dot_dimension_numbers<[1], [0], [0], [1], [0, 0, 1, 1], [], []>} : vector<32x12xbf16>, vector<12x512xbf16>, vector<32x512xf32> -> vector<32x512xf32>
    %47 = arith.addf %44, %46 : vector<32x512xf32>
    %48 = vector.broadcast %18 : vector<32x1xf32> to vector<32x512xf32>
    %49 = arith.addf %47, %48 : vector<32x512xf32>
    %50 = vector.extract_strided_slice %49 {offsets = [0, 0], sizes = [8, 512], strides = [1, 1]} : vector<32x512xf32> to vector<8x512xf32>
    %51 = vector.extract_strided_slice %49 {offsets = [8, 0], sizes = [8, 512], strides = [1, 1]} : vector<32x512xf32> to vector<8x512xf32>
    %52 = vector.extract_strided_slice %49 {offsets = [16, 0], sizes = [8, 512], strides = [1, 1]} : vector<32x512xf32> to vector<8x512xf32>
    %53 = vector.extract_strided_slice %49 {offsets = [24, 0], sizes = [8, 512], strides = [1, 1]} : vector<32x512xf32> to vector<8x512xf32>
    %54 = arith.negf %50 : vector<8x512xf32>
    %55 = math.exp %54 : vector<8x512xf32>
    %cst_31 = arith.constant 1.000000e+00 : f32
    %56 = vector.broadcast %cst_31 : f32 to vector<8x512xf32>
    %57 = arith.addf %56, %55 : vector<8x512xf32>
    %58 = arith.divf %56, %57 : vector<8x512xf32>
    %59 = arith.negf %52 : vector<8x512xf32>
    %60 = math.exp %59 : vector<8x512xf32>
    %cst_32 = arith.constant 1.000000e+00 : f32
    %61 = vector.broadcast %cst_32 : f32 to vector<8x512xf32>
    %62 = arith.addf %61, %60 : vector<8x512xf32>
    %63 = arith.divf %61, %62 : vector<8x512xf32>
    %c0_33 = arith.constant 0 : index
    %c0_34 = arith.constant 0 : index
    %64 = vector.load %arg3[%c0_33, %c0_34] : memref<8x1024xf32, #tpu.memory_space<vmem>>, vector<8x512xf32>
    %65 = arith.mulf %63, %64 : vector<8x512xf32>
    %66 = math.tanh %51 : vector<8x512xf32>
    %67 = arith.mulf %58, %66 : vector<8x512xf32>
    %68 = arith.addf %65, %67 : vector<8x512xf32>
    %69 = arith.negf %53 : vector<8x512xf32>
    %70 = math.exp %69 : vector<8x512xf32>
    %cst_35 = arith.constant 1.000000e+00 : f32
    %71 = vector.broadcast %cst_35 : f32 to vector<8x512xf32>
    %72 = arith.addf %71, %70 : vector<8x512xf32>
    %73 = arith.divf %71, %72 : vector<8x512xf32>
    %c0_36 = arith.constant 0 : index
    %c0_37 = arith.constant 0 : index
    %74 = vector.load %arg7[%c0_36, %c0_37] : memref<8x1024xf32, #tpu.memory_space<vmem>>, vector<8x512xf32>
    tpu.vector_store %arg7[%c0_36, %c0_37], %68 {strides = array<i32>} : memref<8x1024xf32, #tpu.memory_space<vmem>>, vector<8x512xf32>,
    %75 = math.tanh %68 : vector<8x512xf32>
    %76 = arith.mulf %73, %75 : vector<8x512xf32>
    %c0_38 = arith.constant 0 : index
    %c0_39 = arith.constant 0 : index
    %77 = vector.load %arg6[%c0_38, %c0_39] : memref<8x1024xf32, #tpu.memory_space<vmem>>, vector<8x512xf32>
    tpu.vector_store %arg6[%c0_38, %c0_39], %76 {strides = array<i32>} : memref<8x1024xf32, #tpu.memory_space<vmem>>, vector<8x512xf32>,
    %c0_40 = arith.constant 0 : index
    %c512 = arith.constant 512 : index
    %78 = vector.load %arg1[%c0_40, %c512] : memref<12x1024xbf16, #tpu.memory_space<vmem>>, vector<12x512xbf16>
    %c0_41 = arith.constant 0 : index
    %c0_42 = arith.constant 0 : index
    %79 = vector.load %arg2[%c0_41, %c0_42] : memref<12x128xbf16, #tpu.memory_space<vmem>>, vector<12x128xbf16>
    %80 = tpu.concatenate %78, %79 in 1 : vector<12x512xbf16>, vector<12x128xbf16> -> vector<12x640xbf16>
    %cst_43 = arith.constant 0.000000e+00 : f32
    %81 = vector.broadcast %cst_43 : f32 to vector<32x512xf32>
    %82 = vector.extract_strided_slice %80 {offsets = [0, 0], sizes = [12, 512], strides = [1, 1]} : vector<12x640xbf16> to vector<12x512xbf16>
    %cst_44 = arith.constant dense<0.000000e+00> : vector<32x512xf32>
    %83 = tpu.matmul %1, %82, %cst_44 {dimension_numbers = #tpu.dot_dimension_numbers<[1], [0], [0], [1], [0, 0, 1, 1], [], []>} : vector<32x12xbf16>, vector<12x512xbf16>, vector<32x512xf32> -> vector<32x512xf32>
    %84 = arith.addf %81, %83 : vector<32x512xf32>
    %85 = vector.extract_strided_slice %80 {offsets = [0, 1], sizes = [12, 512], strides = [1, 1]} : vector<12x640xbf16> to vector<12x512xbf16>
    %cst_45 = arith.constant dense<0.000000e+00> : vector<32x512xf32>
    %86 = tpu.matmul %3, %85, %cst_45 {dimension_numbers = #tpu.dot_dimension_numbers<[1], [0], [0], [1], [0, 0, 1, 1], [], []>} : vector<32x12xbf16>, vector<12x512xbf16>, vector<32x512xf32> -> vector<32x512xf32>
    %87 = arith.addf %84, %86 : vector<32x512xf32>
    %88 = vector.extract_strided_slice %80 {offsets = [0, 2], sizes = [12, 512], strides = [1, 1]} : vector<12x640xbf16> to vector<12x512xbf16>
    %cst_46 = arith.constant dense<0.000000e+00> : vector<32x512xf32>
    %89 = tpu.matmul %5, %88, %cst_46 {dimension_numbers = #tpu.dot_dimension_numbers<[1], [0], [0], [1], [0, 0, 1, 1], [], []>} : vector<32x12xbf16>, vector<12x512xbf16>, vector<32x512xf32> -> vector<32x512xf32>
    %90 = arith.addf %87, %89 : vector<32x512xf32>
    %91 = vector.extract_strided_slice %80 {offsets = [0, 18], sizes = [12, 512], strides = [1, 1]} : vector<12x640xbf16> to vector<12x512xbf16>
    %cst_47 = arith.constant dense<0.000000e+00> : vector<32x512xf32>
    %92 = tpu.matmul %7, %91, %cst_47 {dimension_numbers = #tpu.dot_dimension_numbers<[1], [0], [0], [1], [0, 0, 1, 1], [], []>} : vector<32x12xbf16>, vector<12x512xbf16>, vector<32x512xf32> -> vector<32x512xf32>
    %93 = arith.addf %90, %92 : vector<32x512xf32>
    %94 = vector.extract_strided_slice %80 {offsets = [0, 19], sizes = [12, 512], strides = [1, 1]} : vector<12x640xbf16> to vector<12x512xbf16>
    %cst_48 = arith.constant dense<0.000000e+00> : vector<32x512xf32>
    %95 = tpu.matmul %9, %94, %cst_48 {dimension_numbers = #tpu.dot_dimension_numbers<[1], [0], [0], [1], [0, 0, 1, 1], [], []>} : vector<32x12xbf16>, vector<12x512xbf16>, vector<32x512xf32> -> vector<32x512xf32>
    %96 = arith.addf %93, %95 : vector<32x512xf32>
    %97 = vector.extract_strided_slice %80 {offsets = [0, 20], sizes = [12, 512], strides = [1, 1]} : vector<12x640xbf16> to vector<12x512xbf16>
    %cst_49 = arith.constant dense<0.000000e+00> : vector<32x512xf32>
    %98 = tpu.matmul %11, %97, %cst_49 {dimension_numbers = #tpu.dot_dimension_numbers<[1], [0], [0], [1], [0, 0, 1, 1], [], []>} : vector<32x12xbf16>, vector<12x512xbf16>, vector<32x512xf32> -> vector<32x512xf32>
    %99 = arith.addf %96, %98 : vector<32x512xf32>
    %100 = vector.extract_strided_slice %80 {offsets = [0, 36], sizes = [12, 512], strides = [1, 1]} : vector<12x640xbf16> to vector<12x512xbf16>
    %cst_50 = arith.constant dense<0.000000e+00> : vector<32x512xf32>
    %101 = tpu.matmul %13, %100, %cst_50 {dimension_numbers = #tpu.dot_dimension_numbers<[1], [0], [0], [1], [0, 0, 1, 1], [], []>} : vector<32x12xbf16>, vector<12x512xbf16>, vector<32x512xf32> -> vector<32x512xf32>
    %102 = arith.addf %99, %101 : vector<32x512xf32>
    %103 = vector.extract_strided_slice %80 {offsets = [0, 37], sizes = [12, 512], strides = [1, 1]} : vector<12x640xbf16> to vector<12x512xbf16>
    %cst_51 = arith.constant dense<0.000000e+00> : vector<32x512xf32>
    %104 = tpu.matmul %15, %103, %cst_51 {dimension_numbers = #tpu.dot_dimension_numbers<[1], [0], [0], [1], [0, 0, 1, 1], [], []>} : vector<32x12xbf16>, vector<12x512xbf16>, vector<32x512xf32> -> vector<32x512xf32>
    %105 = arith.addf %102, %104 : vector<32x512xf32>
    %106 = vector.extract_strided_slice %80 {offsets = [0, 38], sizes = [12, 512], strides = [1, 1]} : vector<12x640xbf16> to vector<12x512xbf16>
    %cst_52 = arith.constant dense<0.000000e+00> : vector<32x512xf32>
    %107 = tpu.matmul %17, %106, %cst_52 {dimension_numbers = #tpu.dot_dimension_numbers<[1], [0], [0], [1], [0, 0, 1, 1], [], []>} : vector<32x12xbf16>, vector<12x512xbf16>, vector<32x512xf32> -> vector<32x512xf32>
    %108 = arith.addf %105, %107 : vector<32x512xf32>
    %109 = vector.broadcast %18 : vector<32x1xf32> to vector<32x512xf32>
    %110 = arith.addf %108, %109 : vector<32x512xf32>
    %111 = vector.extract_strided_slice %110 {offsets = [0, 0], sizes = [8, 512], strides = [1, 1]} : vector<32x512xf32> to vector<8x512xf32>
    %112 = vector.extract_strided_slice %110 {offsets = [8, 0], sizes = [8, 512], strides = [1, 1]} : vector<32x512xf32> to vector<8x512xf32>
    %113 = vector.extract_strided_slice %110 {offsets = [16, 0], sizes = [8, 512], strides = [1, 1]} : vector<32x512xf32> to vector<8x512xf32>
    %114 = vector.extract_strided_slice %110 {offsets = [24, 0], sizes = [8, 512], strides = [1, 1]} : vector<32x512xf32> to vector<8x512xf32>
    %115 = arith.negf %111 : vector<8x512xf32>
    %116 = math.exp %115 : vector<8x512xf32>
    %cst_53 = arith.constant 1.000000e+00 : f32
    %117 = vector.broadcast %cst_53 : f32 to vector<8x512xf32>
    %118 = arith.addf %117, %116 : vector<8x512xf32>
    %119 = arith.divf %117, %118 : vector<8x512xf32>
    %120 = arith.negf %113 : vector<8x512xf32>
    %121 = math.exp %120 : vector<8x512xf32>
    %cst_54 = arith.constant 1.000000e+00 : f32
    %122 = vector.broadcast %cst_54 : f32 to vector<8x512xf32>
    %123 = arith.addf %122, %121 : vector<8x512xf32>
    %124 = arith.divf %122, %123 : vector<8x512xf32>
    %c0_55 = arith.constant 0 : index
    %c512_56 = arith.constant 512 : index
    %125 = vector.load %arg3[%c0_55, %c512_56] : memref<8x1024xf32, #tpu.memory_space<vmem>>, vector<8x512xf32>
    %126 = arith.mulf %124, %125 : vector<8x512xf32>
    %127 = math.tanh %112 : vector<8x512xf32>
    %128 = arith.mulf %119, %127 : vector<8x512xf32>
    %129 = arith.addf %126, %128 : vector<8x512xf32>
    %130 = arith.negf %114 : vector<8x512xf32>
    %131 = math.exp %130 : vector<8x512xf32>
    %cst_57 = arith.constant 1.000000e+00 : f32
    %132 = vector.broadcast %cst_57 : f32 to vector<8x512xf32>
    %133 = arith.addf %132, %131 : vector<8x512xf32>
    %134 = arith.divf %132, %133 : vector<8x512xf32>
    %c0_58 = arith.constant 0 : index
    %c512_59 = arith.constant 512 : index
    %135 = vector.load %arg7[%c0_58, %c512_59] : memref<8x1024xf32, #tpu.memory_space<vmem>>, vector<8x512xf32>
    tpu.vector_store %arg7[%c0_58, %c512_59], %129 {strides = array<i32>} : memref<8x1024xf32, #tpu.memory_space<vmem>>, vector<8x512xf32>,
    %136 = math.tanh %129 : vector<8x512xf32>
    %137 = arith.mulf %134, %136 : vector<8x512xf32>
    %c0_60 = arith.constant 0 : index
    %c512_61 = arith.constant 512 : index
    %138 = vector.load %arg6[%c0_60, %c512_61] : memref<8x1024xf32, #tpu.memory_space<vmem>>, vector<8x512xf32>
    tpu.vector_store %arg6[%c0_60, %c512_61], %137 {strides = array<i32>} : memref<8x1024xf32, #tpu.memory_space<vmem>>, vector<8x512xf32>,
    return
  }
  func.func @transform_0(%arg0: i32) -> (i32, i32) {
    %c0_i32 = arith.constant 0 : i32
    %c0_i32_0 = arith.constant 0 : i32
    return %c0_i32, %arg0 : i32, i32
  }
  func.func @transform_1(%arg0: i32) -> (i32, i32) {
    %c1_i32 = arith.constant 1 : i32
    %0 = arith.addi %arg0, %c1_i32 : i32
    %c8_i32 = arith.constant 8 : i32
    %1 = arith.muli %0, %c8_i32 : i32
    %c0_i32 = arith.constant 0 : i32
    %c0_i32_0 = arith.constant 0 : i32
    return %c0_i32, %1 : i32, i32
  }
  func.func @transform_2(%arg0: i32) -> (i32, i32) {
    %c0_i32 = arith.constant 0 : i32
    %c0_i32_0 = arith.constant 0 : i32
    return %c0_i32, %arg0 : i32, i32
  }
  func.func @transform_3(%arg0: i32) -> (i32, i32, i32) {
    %c0_i32 = arith.constant 0 : i32
    %c0_i32_0 = arith.constant 0 : i32
    %c0_i32_1 = arith.constant 0 : i32
    %c0_i32_2 = arith.constant 0 : i32
    return %c0_i32, %c0_i32_0, %c0_i32_1 : i32, i32, i32
  }
  func.func @transform_4(%arg0: i32) -> (i32, i32) {
    %c0_i32 = arith.constant 0 : i32
    %c0_i32_0 = arith.constant 0 : i32
    %c0_i32_1 = arith.constant 0 : i32
    return %c0_i32, %c0_i32_0 : i32, i32
  }
  func.func @transform_5(%arg0: i32) -> (i32, i32) {
    %c0_i32 = arith.constant 0 : i32
    %c0_i32_0 = arith.constant 0 : i32
    return %c0_i32, %arg0 : i32, i32
  }
  func.func @transform_6(%arg0: i32) -> (i32, i32) {
    %c0_i32 = arith.constant 0 : i32
    %c0_i32_0 = arith.constant 0 : i32
    return %c0_i32, %arg0 : i32, i32
  }
}

</mosaic_0001>

<bundles_post_ra>
// kernel: npunit_forward.1
= control target key start
LH: loop header
LB: loop body
LE: loop exit
PB: predicated region body
PF: predicated region fallthrough
CT: control target
= control target key end

     0   :  { %s3492_s9 = smov 127   ;;  %s3493_s10 = smov 126   ;;  %vm204_vm0 = vcmask 1039360   ;;  %vm216_vm1 = vcmask 1045504   ;;  %vm209_vm2 = vcmask 97280   ;;  %vm429_vm3 = vcmask 1031168   ;;  %s5218_s0 = inlined_call_operand.vmem [shape: bf16[12,2048], index: 0, kind: input, shape index: {}, may-alias: {0,1}]   ;;  %s5219_s1 = inlined_call_operand.vmem [shape: bf16[12,2048], index: 1, kind: input, shape index: {}, may-alias: {0,1}]   ;;  %s5220_s2 = inlined_call_operand.vmem [shape: f32[8,1024], index: 2, kind: input, shape index: {}]   ;;  %s5221_s3 = inlined_call_operand.vmem [shape: bf16[9,32,12], index: 3, kind: input, shape index: {}]   ;;  %s5222_s4 = inlined_call_operand.vmem [shape: f32[32,1], index: 4, kind: input, shape index: {}]   ;;  %s5223_s5 = inlined_call_operand.vmem [shape: f32[8,1024], index: 5, kind: output, shape index: {0}]   ;;  %s5224_s6 = inlined_call_operand.vmem [shape: f32[8,1024], index: 6, kind: output, shape index: {1}]  }
   0x1   :  { %v30_v0 = vld [vmem:[%s5218_s0 + $0x10] sm:$0xff]  ;;  %v28_v2 = vld [vmem:[%s5218_s0 + $0x8] sm:$0xff]  ;;  %v26_v4 = vld [vmem:[%s5218_s0] sm:$0xff]  ;;  %s3494_s11 = smov 110   ;;  %s3495_s12 = smov 109   ;;  %vm564_vm4 = vcmask 900096  }
   0x2   :  { %v38_v1 = vld [vmem:[%s5218_s0 + $0x50] sm:$0xff]  ;;  %31 = vst [vmem:[#allocation2 + $0x10] sm:$0xff] %v30_v0  ;;  %v36_v3 = vld [vmem:[%s5218_s0 + $0x48] sm:$0xff]  ;;  %v34_v5 = vld [vmem:[%s5218_s0 + $0x40] sm:$0xff]  ;;  %s3496_s13 = smov 108   ;;  %s3497_s14 = smov 92  }
   0x3   :  { %39 = vst [vmem:[#allocation2 + $0x30] sm:$0xff] %v38_v1  ;;  %s3498_s15 = smov 91   ;;  %s3499_s16 = smov 90   ;;  %v3630_v27 = vld [vmem:[%s5221_s3 + $0x10] sm:$0xff]  ;;  %v3657_v44 = vld [vmem:[%s5221_s3 + $0x18] sm:$0xff]  ;;  %v3676_v54 = vld [vmem:[%s5221_s3] sm:$0xff] }
   0x4   :  { %29 = vst [vmem:[#allocation2 + $0x8] sm:$0xff] %v28_v2  ;;  %vm699_vm5 = vcmask 891904   ;;  %vm834_vm6 = vcmask 883712   ;;  %vm969_vm7 = vcmask 752640   ;;  %vm1104_vm8 = vcmask 744448  }
   0x5   :  { %37 = vst [vmem:[#allocation2 + $0x28] sm:$0xff] %v36_v3  ;;  %v3309_v3 = vld [vmem:[%s5221_s3 + $0x8] sm:$0xff]  ;;  %vm1239_vm9 = vcmask 736256  }
   0x6   :  { %27 = vst [vmem:[#allocation2] sm:$0xff] %v26_v4 }
   0x7   :  { %35 = vst [vmem:[#allocation2 + $0x20] sm:$0xff] %v34_v5  ;;  %v3312_v5 = vld [vmem:[%s5221_s3 + $0x20] sm:$0xff] }
   0x9   :  { %v3054_v6 = vld [vmem:[#allocation2 + $0x10] sm:$0xf] }
   0xa   :  { %v3330_v7 = vld [vmem:[#allocation2 + $0x2c] sm:$0x30] }
   0xb   :  { %v3055_v8 = vor.u32 %v3330_v7, %v3054_v6  ;;  %v3046_v9 = vld [vmem:[#allocation2 + $0x8] sm:$0xf]  ;;  %v3327_v17 = vld [vmem:[#allocation2 + $0xc] sm:$0xf] }
   0xc   :  { %v3329_v10 = vld [vmem:[#allocation2 + $0x24] sm:$0x30]  ;;  %v3048_v18 = vld [vmem:[#allocation2 + $0x28] sm:$0x30] }
   0xd   :  { %202 = vrot.lane.b32.xlu1 %v3055_v8, %s3492_s9  ;;  %v3555_v11 = vor.u32 %v3329_v10, %v3046_v9  ;;  %v3326_v12 = vld [vmem:[#allocation2 + $0x4] sm:$0xf]  ;;  %v3038_v13 = vld [vmem:[#allocation2] sm:$0xf]  ;;  %v3562_v20 = vor.u32 %v3327_v17, %v3048_v18  ;;  %v3313_v18 = vld [vmem:[%s5221_s3 + $0x28] sm:$0xff] }
   0xe   :  { %v3328_v14 = vld [vmem:[#allocation2 + $0x1c] sm:$0x30]  ;;  %v3040_v15 = vld [vmem:[#allocation2 + $0x20] sm:$0x30] }
   0xf   :  { %198 = vrot.lane.b32.xlu0 %v3555_v11, %s3492_s9  ;;  %v3043_v16 = vor.u32 %v3326_v12, %v3040_v15  ;;  %v3559_v19 = vor.u32 %v3328_v14, %v3038_v13  ;;  %v328_v35 = vsel %vm216_vm1, %v3555_v11, 0  ;;  %v331_v38 = vsel %vm216_vm1, %v3562_v20, 0 }
  0x11   :  { %196 = vrot.lane.b32.xlu2 %v3043_v16, %s3492_s9  ;;  %v325_v25 = vsel %vm216_vm1, %v3043_v16, 0  ;;  %v322_v30 = vsel %vm216_vm1, %v3559_v19, 0 }
  0x15   :  { %194 = vrot.lane.b32.xlu1 %v3559_v19, %s3492_s9 }
  0x17   :  { %200 = vrot.lane.b32.xlu0 %v3562_v20, %s3492_s9 }
  0x19   :  { %423 = vrot.lane.b32.xlu2 %v3555_v11, %s3493_s10 }
  0x1d   :  { %427 = vrot.lane.b32.xlu1 %v3055_v8, %s3493_s10 }
  0x1f   :  { %425 = vrot.lane.b32.xlu0 %v3562_v20, %s3493_s10 }
  0x21   :  { %419 = vrot.lane.b32.xlu2 %v3559_v19, %s3493_s10 }
  0x25   :  { %558 = vrot.lane.b32.xlu1 %v3555_v11, %s3494_s11 }
  0x27   :  { %421 = vrot.lane.b32.xlu0 %v3043_v16, %s3493_s10 }
  0x29   :  { %560 = vrot.lane.b32.xlu2 %v3562_v20, %s3494_s11 }
  0x2d   :  { %554 = vrot.lane.b32.xlu1 %v3559_v19, %s3494_s11 }
  0x2f   :  { %562 = vrot.lane.b32.xlu0 %v3055_v8, %s3494_s11 }
  0x31   :  { %556 = vrot.lane.b32.xlu2 %v3043_v16, %s3494_s11 }
  0x35   :  { %695 = vrot.lane.b32.xlu1 %v3562_v20, %s3495_s12 }
  0x37   :  { %693 = vrot.lane.b32.xlu0 %v3555_v11, %s3495_s12 }
  0x39   :  { %697 = vrot.lane.b32.xlu2 %v3055_v8, %s3495_s12 }
  0x3d   :  { %691 = vrot.lane.b32.xlu1 %v3043_v16, %s3495_s12 }
  0x3f   :  { %689 = vrot.lane.b32.xlu0 %v3559_v19, %s3495_s12 }
  0x41   :  { %828 = vrot.lane.b32.xlu2 %v3555_v11, %s3496_s13 }
  0x45   :  { %832 = vrot.lane.b32.xlu1 %v3055_v8, %s3496_s13 }
  0x47   :  { %830 = vrot.lane.b32.xlu0 %v3562_v20, %s3496_s13 }
  0x49   :  { %824 = vrot.lane.b32.xlu2 %v3559_v19, %s3496_s13 }
  0x4d   :  { %963 = vrot.lane.b32.xlu1 %v3555_v11, %s3497_s14 }
  0x4f   :  { %826 = vrot.lane.b32.xlu0 %v3043_v16, %s3496_s13 }
  0x51   :  { %965 = vrot.lane.b32.xlu2 %v3562_v20, %s3497_s14 }
  0x55   :  { %959 = vrot.lane.b32.xlu1 %v3559_v19, %s3497_s14 }
  0x57   :  { %967 = vrot.lane.b32.xlu0 %v3055_v8, %s3497_s14 }
  0x59   :  { %961 = vrot.lane.b32.xlu2 %v3043_v16, %s3497_s14 }
  0x5d   :  { %1100 = vrot.lane.b32.xlu1 %v3562_v20, %s3498_s15 }
  0x5f   :  { %1098 = vrot.lane.b32.xlu0 %v3555_v11, %s3498_s15 }
  0x61   :  { %1102 = vrot.lane.b32.xlu2 %v3055_v8, %s3498_s15 }
  0x65   :  { %1096 = vrot.lane.b32.xlu1 %v3043_v16, %s3498_s15 }
  0x67   :  { %1094 = vrot.lane.b32.xlu0 %v3559_v19, %s3498_s15 }
  0x69   :  { %1233 = vrot.lane.b32.xlu2 %v3555_v11, %s3499_s16 }
  0x6b   :  { %v197_v22 = vpop.permute.xlu2 %196 }
  0x6d   :  { %1237 = vrot.lane.b32.xlu1 %v3055_v8, %s3499_s16 }
  0x6f   :  { %1235 = vrot.lane.b32.xlu0 %v3562_v20, %s3499_s16  ;;  %v3314_v20 = vld [vmem:[%s5221_s3 + $0x30] sm:$0xff] }
  0x71   :  { %1229 = vrot.lane.b32.xlu2 %v3559_v19, %s3499_s16 }
  0x73   :  { %v424_v39 = vpop.permute.xlu2 %423 }
  0x77   :  { %1231 = vrot.lane.b32.xlu0 %v3043_v16, %s3499_s16 }
  0x7b   :  { %v420_v47 = vpop.permute.xlu2 %419 }
  0x7f   :  { %v203_v21 = vpop.permute.xlu1 %202 }
  0x81   :  { %v199_v23 = vpop.permute.xlu0 %198 }
  0x82   :  { %v206_v24 = vsel %vm204_vm0, %v197_v22, %v199_v23 }
  0x83   :  { %v221_v26 = vsel %vm216_vm1, %v206_v24, 0  ;;  %v561_v53 = vpop.permute.xlu2 %560 }
  0x84   :  { %255 = vmatpush.bf16.msra.mxu1 %v221_v26 }
  0x87   :  { %3058 = vmatmul.msk.bf16.vlgmr.msra.gmra.mxu1 %vm209_vm2, %v3630_v27  ;;  %v195_v28 = vpop.permute.xlu1 %194 }
  0x88   :  { %359 = vmatpush.bf16.msrb.mxu1 %v325_v25  ;;  %v205_v29 = vsel %vm204_vm0, %v195_v28, %v197_v22 }
  0x89   :  { %v201_v31 = vpop.permute.xlu0 %200  ;;  %v218_v32 = vsel %vm216_vm1, %v205_v29, 0 }
  0x8a   :  { %236 = vmatpush.bf16.msra.mxu0 %v218_v32  ;;  %v207_v33 = vsel %vm204_vm0, %v199_v23, %v201_v31  ;;  %v208_v34 = vsel %vm204_vm0, %v201_v31, %v203_v21  ;;  %v3315_v32 = vld [vmem:[%s5221_s3 + $0x38] sm:$0xff] }
  0x8b   :  { %v224_v36 = vsel %vm216_vm1, %v207_v33, 0  ;;  %v227_v37 = vsel %vm216_vm1, %v208_v34, 0  ;;  %v557_v57 = vpop.permute.xlu2 %556 }
  0x8c   :  { %274 = vmatpush.bf16.msra.mxu2 %v224_v36  ;;  %293 = vmatpush.bf16.msra.mxu3 %v227_v37  ;;  %v40_v36 = vld [vmem:[%s5218_s0 + $0x58] sm:$0xff]  ;;  %v2994_v37 = vld [vmem:[%s5219_s1 + $0x20] sm:$0xf] }
  0x8d   :  { %3056 = vmatmul.msk.bf16.vlgmr.msra.gmra.mxu0 %vm209_vm2, %v3630_v27  ;;  %41 = vst [vmem:[#allocation2 + $0x38] sm:$0xff] %v40_v36 }
  0x8e   :  { %340 = vmatpush.bf16.msrb.mxu0 %v322_v30  ;;  %68 = vst [vmem:[#allocation3] sm:$0xf] %v2994_v37 }
  0x8f   :  { %3060 = vmatmul.msk.bf16.vlgmr.msra.gmra.mxu2 %vm209_vm2, %v3630_v27  ;;  %3062 = vmatmul.msk.bf16.vlgmr.msra.gmra.mxu3 %vm209_vm2, %v3630_v27  ;;  %v428_v40 = vpop.permute.xlu1 %427 }
  0x90   :  { %378 = vmatpush.bf16.msrb.mxu2 %v328_v35  ;;  %397 = vmatpush.bf16.msrb.mxu3 %v331_v38  ;;  %v32_v35 = vld [vmem:[%s5218_s0 + $0x18] sm:$0xff]  ;;  %v2995_v38 = vld [vmem:[%s5219_s1 + $0x60] sm:$0xf] }
  0x91   :  { %v426_v41 = vpop.permute.xlu0 %425  ;;  %33 = vst [vmem:[#allocation2 + $0x18] sm:$0xff] %v32_v35 }
  0x92   :  { %v433_v42 = vsel %vm429_vm3, %v426_v41, %v428_v40  ;;  %v432_v43 = vsel %vm429_vm3, %v424_v39, %v426_v41  ;;  %70 = vst [vmem:[#allocation3 + $0x4] sm:$0xf] %v2995_v38 }
  0x93   :  { %v450_v45 = vsel %vm216_vm1, %v433_v42, 0  ;;  %v447_v46 = vsel %vm216_vm1, %v432_v43, 0  ;;  %v698_v9 = vpop.permute.xlu2 %697 }
  0x94   :  { %497 = vmatpush.bf16.msra.mxu2 %v447_v46  ;;  %516 = vmatpush.bf16.msra.mxu3 %v450_v45  ;;  %v3334_v40 = vld [vmem:[#allocation2 + $0x34] sm:$0x30]  ;;  %v3316_v46 = vld [vmem:[%s5221_s3 + $0x40] sm:$0xff] }
  0x95   :  { %v3222_v42 = vld [vmem:[#allocation3] sm:$0xf] }
  0x97   :  { %3059 = vmatmul.msk.bf16.gmra.mxu1 %vm209_vm2, %v3657_v44  ;;  %v559_v55 = vpop.permute.xlu1 %558 }
  0x98   :  { %v566_v58 = vsel %vm564_vm4, %v557_v57, %v559_v55  ;;  %v567_v59 = vsel %vm564_vm4, %v559_v55, %v561_v53 }
  0x99   :  { %v422_v48 = vpop.permute.xlu0 %421  ;;  %v579_v61 = vsel %vm216_vm1, %v566_v58, 0  ;;  %v582_v62 = vsel %vm216_vm1, %v567_v59, 0  ;;  %v3335_v43 = vld [vmem:[#allocation3] sm:$0x30] }
  0x9a   :  { %v431_v49 = vsel %vm429_vm3, %v422_v48, %v424_v39  ;;  %v430_v50 = vsel %vm429_vm3, %v420_v47, %v422_v48  ;;  %v3214_v39 = vld [vmem:[#allocation2 + $0x18] sm:$0xf]  ;;  %v3764_v47 = vor.u32 %v3335_v43, %v3222_v42 }
  0x9b   :  { %v444_v51 = vsel %vm216_vm1, %v431_v49, 0  ;;  %v441_v52 = vsel %vm216_vm1, %v430_v50, 0  ;;  %v829_v23 = vpop.permute.xlu2 %828  ;;  %v3757_v41 = vor.u32 %v3334_v40, %v3214_v39  ;;  %v3206_v49 = vld [vmem:[#allocation2 + $0x10] sm:$0xf] }
  0x9c   :  { %478 = vmatpush.bf16.msra.mxu1 %v444_v51  ;;  %459 = vmatpush.bf16.msra.mxu0 %v441_v52  ;;  %v3333_v50 = vld [vmem:[#allocation2 + $0x2c] sm:$0x30]  ;;  %v3332_v52 = vld [vmem:[#allocation2 + $0x1c] sm:$0xf] }
  0x9d   :  { %3057 = vmatmul.msk.bf16.gmra.mxu0 %vm209_vm2, %v3657_v44  ;;  %1685 = vrot.lane.b32.xlu1 %v3757_v41, %s3492_s9  ;;  %v3771_v51 = vor.u32 %v3333_v50, %v3206_v49  ;;  %v3319_v49 = vld [vmem:[%s5221_s3 + $0x58] sm:$0xff] }
  0x9e   :  { %1689 = vrot.lane.b32.xlu0 %v3764_v47, %s3492_s9 }
  0x9f   :  { %3061 = vmatmul.msk.bf16.gmra.mxu2 %vm209_vm2, %v3657_v44  ;;  %3063 = vmatmul.msk.bf16.gmra.mxu3 %vm209_vm2, %v3657_v44  ;;  %v555_v0 = vpop.permute.xlu1 %554 }
  0xa0   :  { %v565_v1 = vsel %vm564_vm4, %v555_v0, %v557_v57 }
  0xa1   :  { %v563_v56 = vpop.permute.xlu0 %562  ;;  %v576_v2 = vsel %vm216_vm1, %v565_v1, 0 }
  0xa2   :  { %v568_v60 = vsel %vm564_vm4, %v561_v53, %v563_v56  ;;  %v3216_v53 = vld [vmem:[#allocation2 + $0x38] sm:$0x30] }
  0xa3   :  { %v585_v63 = vsel %vm216_vm1, %v568_v60, 0  ;;  %v825_v31 = vpop.permute.xlu2 %824  ;;  %v3773_v55 = vor.u32 %v3332_v52, %v3216_v53 }
  0xa5   :  { %1687 = vrot.lane.b32.xlu2 %v3773_v55, %s3492_s9  ;;  %1681 = vrot.lane.b32.xlu1 %v3771_v51, %s3492_s9 }
  0xa6   :  { %1875 = vrot.lane.b32.xlu0 %v3757_v41, %s3493_s10 }
  0xa7   :  { %3074 = vmatmul.msk.bf16.vlgmr.msrb.gmra.mxu1 %vm209_vm2, %v3676_v54  ;;  %v696_v4 = vpop.permute.xlu1 %695 }
  0xa8   :  { %613 = vmatpush.bf16.msrb.mxu1 %v579_v61  ;;  %v703_v12 = vsel %vm699_vm5, %v696_v4, %v698_v9  ;;  %v3317_v9 = vld [vmem:[%s5221_s3 + $0x48] sm:$0xff] }
  0xa9   :  { %v694_v7 = vpop.permute.xlu0 %693  ;;  %v720_v14 = vsel %vm216_vm1, %v703_v12, 0 }
  0xaa   :  { %v702_v11 = vsel %vm699_vm5, %v694_v7, %v696_v4  ;;  %v3208_v4 = vld [vmem:[#allocation2 + $0x30] sm:$0x30] }
  0xab   :  { %v717_v13 = vsel %vm216_vm1, %v702_v11, 0  ;;  %v966_v45 = vpop.permute.xlu2 %965 }
  0xad   :  { %3072 = vmatmul.msk.bf16.vlgmr.msrb.gmra.mxu0 %vm209_vm2, %v3676_v54  ;;  %1877 = vrot.lane.b32.xlu1 %v3773_v55, %s3493_s10 }
  0xae   :  { %594 = vmatpush.bf16.msrb.mxu0 %v576_v2  ;;  %1871 = vrot.lane.b32.xlu0 %v3771_v51, %s3493_s10 }
  0xaf   :  { %3076 = vmatmul.msk.bf16.vlgmr.msrb.gmra.mxu2 %vm209_vm2, %v3676_v54  ;;  %3078 = vmatmul.msk.bf16.vlgmr.msrb.gmra.mxu3 %vm209_vm2, %v3676_v54  ;;  %v692_v6 = vpop.permute.xlu1 %691 }
  0xb0   :  { %632 = vmatpush.bf16.msrb.mxu2 %v582_v62  ;;  %651 = vmatpush.bf16.msrb.mxu3 %v585_v63  ;;  %v701_v8 = vsel %vm699_vm5, %v692_v6, %v694_v7 }
  0xb1   :  { %v714_v10 = vsel %vm216_vm1, %v701_v8, 0  ;;  %v690_v15 = vpop.permute.xlu0 %689 }
  0xb2   :  { %v700_v16 = vsel %vm699_vm5, %v690_v15, %v692_v6 }
  0xb3   :  { %v711_v17 = vsel %vm216_vm1, %v700_v16, 0  ;;  %v962_v60 = vpop.permute.xlu2 %961 }
  0xb6   :  { %1995 = vrot.lane.b32.xlu0 %v3773_v55, %s3494_s11 }
  0xb7   :  { %3075 = vmatmul.msk.bf16.gmra.mxu1 %vm209_vm2, %v3309_v3  ;;  %v833_v21 = vpop.permute.xlu1 %832 }
  0xb9   :  { %v831_v19 = vpop.permute.xlu0 %830 }
  0xba   :  { %v838_v25 = vsel %vm834_vm6, %v831_v19, %v833_v21  ;;  %v837_v26 = vsel %vm834_vm6, %v829_v23, %v831_v19  ;;  %v3318_v21 = vld [vmem:[%s5221_s3 + $0x50] sm:$0xff] }
  0xbb   :  { %v855_v29 = vsel %vm216_vm1, %v838_v25, 0  ;;  %v852_v30 = vsel %vm216_vm1, %v837_v26, 0  ;;  %v1103_v36 = vpop.permute.xlu2 %1102 }
  0xbd   :  { %3073 = vmatmul.msk.bf16.gmra.mxu0 %vm209_vm2, %v3309_v3 }
  0xbf   :  { %3077 = vmatmul.msk.bf16.gmra.mxu2 %vm209_vm2, %v3309_v3  ;;  %3079 = vmatmul.msk.bf16.gmra.mxu3 %vm209_vm2, %v3309_v3  ;;  %v964_v57 = vpop.permute.xlu1 %963  ;;  %v3331_v3 = vld [vmem:[#allocation2 + $0x14] sm:$0xf] }
  0xc0   :  { %v972_v58 = vsel %vm969_vm7, %v964_v57, %v966_v45  ;;  %v971_v63 = vsel %vm969_vm7, %v962_v60, %v964_v57 }
  0xc1   :  { %v827_v22 = vpop.permute.xlu0 %826  ;;  %v987_v0 = vsel %vm216_vm1, %v972_v58, 0  ;;  %v984_v2 = vsel %vm216_vm1, %v971_v63, 0 }
  0xc2   :  { %v836_v24 = vsel %vm834_vm6, %v827_v22, %v829_v23  ;;  %v835_v33 = vsel %vm834_vm6, %v825_v31, %v827_v22 }
  0xc3   :  { %v849_v28 = vsel %vm216_vm1, %v836_v24, 0  ;;  %v846_v34 = vsel %vm216_vm1, %v835_v33, 0 }
  0xc7   :  { %3090 = vmatmul.msk.bf16.vlgmr.msra.gmra.mxu1 %vm209_vm2, %v3312_v5 }
  0xc8   :  { %748 = vmatpush.bf16.msra.mxu1 %v714_v10  ;;  %v960_v10 = vpop.permute.xlu1 %959 }
  0xc9   :  { %v968_v59 = vpop.permute.xlu0 %967  ;;  %v970_v12 = vsel %vm969_vm7, %v960_v10, %v962_v60 }
  0xca   :  { %v973_v62 = vsel %vm969_vm7, %v966_v45, %v968_v59 }
  0xcb   :  { %v990_v1 = vsel %vm216_vm1, %v973_v62, 0 }
  0xcd   :  { %3088 = vmatmul.msk.bf16.vlgmr.msra.gmra.mxu0 %vm209_vm2, %v3312_v5 }
  0xce   :  { %729 = vmatpush.bf16.msra.mxu0 %v711_v17 }
  0xcf   :  { %3092 = vmatmul.msk.bf16.vlgmr.msra.gmra.mxu2 %vm209_vm2, %v3312_v5  ;;  %3094 = vmatmul.msk.bf16.vlgmr.msra.gmra.mxu3 %vm209_vm2, %v3312_v5  ;;  %v3792_v5 = vor.u32 %v3331_v3, %v3208_v4 }
  0xd0   :  { %767 = vmatpush.bf16.msra.mxu2 %v717_v13  ;;  %786 = vmatpush.bf16.msra.mxu3 %v720_v14  ;;  %v981_v13 = vsel %vm216_vm1, %v970_v12, 0  ;;  %v1101_v22 = vpop.permute.xlu1 %1100 }
  0xd1   :  { %1683 = vrot.lane.b32.xlu2 %v3792_v5, %s3492_s9  ;;  %1873 = vrot.lane.b32.xlu1 %v3792_v5, %s3493_s10  ;;  %v1108_v39 = vsel %vm1104_vm8, %v1101_v22, %v1103_v36 }
  0xd2   :  { %1991 = vrot.lane.b32.xlu0 %v3792_v5, %s3494_s11  ;;  %v1125_v40 = vsel %vm216_vm1, %v1108_v39, 0 }
  0xd7   :  { %3091 = vmatmul.msk.bf16.gmra.mxu1 %vm209_vm2, %v3313_v18 }
  0xd9   :  { %1879 = vrot.lane.b32.xlu2 %v3764_v47, %s3493_s10  ;;  %1997 = vrot.lane.b32.xlu1 %v3764_v47, %s3494_s11 }
  0xda   :  { %2115 = vrot.lane.b32.xlu0 %v3764_v47, %s3495_s12 }
  0xdd   :  { %3089 = vmatmul.msk.bf16.gmra.mxu0 %vm209_vm2, %v3313_v18 }
  0xdf   :  { %3093 = vmatmul.msk.bf16.gmra.mxu2 %vm209_vm2, %v3313_v18  ;;  %3095 = vmatmul.msk.bf16.gmra.mxu3 %vm209_vm2, %v3313_v18 }
  0xe1   :  { %1993 = vrot.lane.b32.xlu2 %v3757_v41, %s3494_s11  ;;  %2111 = vrot.lane.b32.xlu1 %v3757_v41, %s3495_s12 }
  0xe2   :  { %2229 = vrot.lane.b32.xlu0 %v3757_v41, %s3496_s13 }
  0xe7   :  { %3106 = vmatmul.msk.bf16.vlgmr.msrb.gmra.mxu1 %vm209_vm2, %v3314_v20 }
  0xe8   :  { %883 = vmatpush.bf16.msrb.mxu1 %v849_v28 }
  0xe9   :  { %1989 = vrot.lane.b32.xlu2 %v3771_v51, %s3494_s11  ;;  %2107 = vrot.lane.b32.xlu1 %v3771_v51, %s3495_s12 }
  0xea   :  { %2225 = vrot.lane.b32.xlu0 %v3771_v51, %s3496_s13 }
  0xed   :  { %3104 = vmatmul.msk.bf16.vlgmr.msrb.gmra.mxu0 %vm209_vm2, %v3314_v20 }
  0xee   :  { %864 = vmatpush.bf16.msrb.mxu0 %v846_v34 }
  0xef   :  { %3108 = vmatmul.msk.bf16.vlgmr.msrb.gmra.mxu2 %vm209_vm2, %v3314_v20  ;;  %3110 = vmatmul.msk.bf16.vlgmr.msrb.gmra.mxu3 %vm209_vm2, %v3314_v20 }
  0xf0   :  { %902 = vmatpush.bf16.msrb.mxu2 %v852_v30  ;;  %921 = vmatpush.bf16.msrb.mxu3 %v855_v29  ;;  %v1097_v29 = vpop.permute.xlu1 %1096 }
  0xf1   :  { %2113 = vrot.lane.b32.xlu2 %v3773_v55, %s3495_s12  ;;  %2231 = vrot.lane.b32.xlu1 %v3773_v55, %s3496_s13 }
  0xf2   :  { %2349 = vrot.lane.b32.xlu0 %v3773_v55, %s3497_s14 }
  0xf7   :  { %3107 = vmatmul.msk.bf16.gmra.mxu1 %vm209_vm2, %v3315_v32 }
  0xf9   :  { %2109 = vrot.lane.b32.xlu2 %v3792_v5, %s3495_s12  ;;  %2227 = vrot.lane.b32.xlu1 %v3792_v5, %s3496_s13 }
  0xfa   :  { %2345 = vrot.lane.b32.xlu0 %v3792_v5, %s3497_s14 }
  0xfd   :  { %3105 = vmatmul.msk.bf16.gmra.mxu0 %vm209_vm2, %v3315_v32 }
  0xff   :  { %3109 = vmatmul.msk.bf16.gmra.mxu2 %vm209_vm2, %v3315_v32  ;;  %3111 = vmatmul.msk.bf16.gmra.mxu3 %vm209_vm2, %v3315_v32  ;;  %v1099_v32 = vpop.permute.xlu0 %1098 }
 0x100   :  { %v1106_v34 = vsel %vm1104_vm8, %v1097_v29, %v1099_v32  ;;  %v1107_v35 = vsel %vm1104_vm8, %v1099_v32, %v1101_v22 }
 0x101   :  { %v1119_v37 = vsel %vm216_vm1, %v1106_v34, 0  ;;  %v1122_v38 = vsel %vm216_vm1, %v1107_v35, 0  ;;  %2233 = vrot.lane.b32.xlu2 %v3764_v47, %s3496_s13  ;;  %2351 = vrot.lane.b32.xlu1 %v3764_v47, %s3497_s14 }
 0x102   :  { %2469 = vrot.lane.b32.xlu0 %v3764_v47, %s3498_s15 }
 0x104   :  { %v3766_v48 = vpop.f32.mrf.mxu1 }
 0x107   :  { %3122 = vmatmul.msk.bf16.vlgmr.msra.gmra.mxu1 %vm209_vm2, %v3316_v46  ;;  %v1095_v53 = vpop.permute.xlu0 %1094 }
 0x108   :  { %1018 = vmatpush.bf16.msra.mxu1 %v984_v2  ;;  %v1105_v57 = vsel %vm1104_vm8, %v1095_v53, %v1097_v29 }
 0x109   :  { %v1116_v58 = vsel %vm216_vm1, %v1105_v57, 0  ;;  %2347 = vrot.lane.b32.xlu2 %v3757_v41, %s3497_s14  ;;  %2465 = vrot.lane.b32.xlu1 %v3757_v41, %s3498_s15 }
 0x10a   :  { %v3775_v56 = vpop.f32.mrf.mxu0  ;;  %2583 = vrot.lane.b32.xlu0 %v3757_v41, %s3499_s16 }
 0x10c   :  { %v259_v61 = vpop.f32.mrf.mxu1 }
 0x10d   :  { %3120 = vmatmul.msk.bf16.vlgmr.msra.gmra.mxu0 %vm209_vm2, %v3316_v46 }
 0x10e   :  { %999 = vmatpush.bf16.msra.mxu0 %v981_v13 }
 0x10f   :  { %3124 = vmatmul.msk.bf16.vlgmr.msra.gmra.mxu2 %vm209_vm2, %v3316_v46  ;;  %3126 = vmatmul.msk.bf16.vlgmr.msra.gmra.mxu3 %vm209_vm2, %v3316_v46  ;;  %v1236_v10 = vpop.permute.xlu0 %1235 }
 0x110   :  { %1037 = vmatpush.bf16.msra.mxu2 %v987_v0  ;;  %1056 = vmatpush.bf16.msra.mxu3 %v990_v1 }
 0x111   :  { %2343 = vrot.lane.b32.xlu2 %v3771_v51, %s3497_s14  ;;  %2461 = vrot.lane.b32.xlu1 %v3771_v51, %s3498_s15 }
 0x112   :  { %v276_v6 = vpop.f32.mrf.mxu2  ;;  %v295_v7 = vpop.f32.mrf.mxu3  ;;  %2579 = vrot.lane.b32.xlu0 %v3771_v51, %s3499_s16 }
 0x113   :  { %v3796_v8 = vpop.f32.mrf.mxu0 }
 0x114   :  { %v3803_v11 = vpop.f32.mrf.mxu1 }
 0x117   :  { %3123 = vmatmul.msk.bf16.gmra.mxu1 %vm209_vm2, %v3317_v9 }
 0x119   :  { %2467 = vrot.lane.b32.xlu2 %v3773_v55, %s3498_s15  ;;  %2585 = vrot.lane.b32.xlu1 %v3773_v55, %s3499_s16 }
 0x11a   :  { %v3810_v14 = vpop.f32.mrf.mxu2  ;;  %v3812_v15 = vpop.f32.mrf.mxu3 }
 0x11b   :  { %v3816_v16 = vpop.f32.mrf.mxu0 }
 0x11c   :  { %v3820_v17 = vpop.f32.mrf.mxu1 }
 0x11d   :  { %3121 = vmatmul.msk.bf16.gmra.mxu0 %vm209_vm2, %v3317_v9 }
 0x11f   :  { %3125 = vmatmul.msk.bf16.gmra.mxu2 %vm209_vm2, %v3317_v9  ;;  %3127 = vmatmul.msk.bf16.gmra.mxu3 %vm209_vm2, %v3317_v9  ;;  %v3320_v9 = vld [vmem:[%s5221_s3 + $0x60] sm:$0xff] }
 0x121   :  { %2463 = vrot.lane.b32.xlu2 %v3792_v5, %s3498_s15  ;;  %2581 = vrot.lane.b32.xlu1 %v3792_v5, %s3499_s16 }
 0x122   :  { %v3827_v18 = vpop.f32.mrf.mxu2  ;;  %v3829_v19 = vpop.f32.mrf.mxu3 }
 0x123   :  { %v3833_v20 = vpop.f32.mrf.mxu0 }
 0x124   :  { %v361_v23 = vpop.f32.mrf.mxu1 }
 0x125   :  { %v3841_v24 = vadd.f32 %v361_v23, %v3766_v48  ;;  %v1232_v23 = vpop.permute.xlu0 %1231 }
 0x127   :  { %3138 = vmatmul.msk.bf16.vlgmr.msrb.gmra.mxu1 %vm209_vm2, %v3318_v21 }
 0x128   :  { %1153 = vmatpush.bf16.msrb.mxu1 %v1119_v37  ;;  %v3321_v37 = vld [vmem:[%s5221_s3 + $0x68] sm:$0xff] }
 0x129   :  { %2587 = vrot.lane.b32.xlu2 %v3764_v47, %s3499_s16 }
 0x12a   :  { %v3846_v25 = vpop.f32.mrf.mxu2  ;;  %v3848_v26 = vpop.f32.mrf.mxu3 }
 0x12b   :  { %v342_v28 = vpop.f32.mrf.mxu0 }
 0x12c   :  { %v3855_v30 = vadd.f32 %v342_v28, %v3775_v56  ;;  %v363_v31 = vpop.f32.mrf.mxu1 }
 0x12d   :  { %v3857_v33 = vadd.f32 %v363_v31, %v259_v61  ;;  %3136 = vmatmul.msk.bf16.vlgmr.msrb.gmra.mxu0 %vm209_vm2, %v3318_v21 }
 0x12e   :  { %1134 = vmatpush.bf16.msrb.mxu0 %v1116_v58 }
 0x12f   :  { %3140 = vmatmul.msk.bf16.vlgmr.msrb.gmra.mxu2 %vm209_vm2, %v3318_v21  ;;  %3142 = vmatmul.msk.bf16.vlgmr.msrb.gmra.mxu3 %vm209_vm2, %v3318_v21 }
 0x130   :  { %1172 = vmatpush.bf16.msrb.mxu2 %v1122_v38  ;;  %1191 = vmatpush.bf16.msrb.mxu3 %v1125_v40 }
 0x132   :  { %v380_v42 = vpop.f32.mrf.mxu2  ;;  %v399_v43 = vpop.f32.mrf.mxu3 }
 0x133   :  { %v3872_v45 = vadd.f32 %v380_v42, %v276_v6  ;;  %v3874_v46 = vadd.f32 %v399_v43, %v295_v7  ;;  %v344_v48 = vpop.f32.mrf.mxu0 }
 0x134   :  { %v3882_v50 = vadd.f32 %v344_v48, %v3796_v8  ;;  %v366_v52 = vpop.f32.mrf.mxu1 }
 0x135   :  { %v3885_v56 = vadd.f32 %v366_v52, %v3803_v11 }
 0x137   :  { %3139 = vmatmul.msk.bf16.gmra.mxu1 %vm209_vm2, %v3319_v49 }
 0x13a   :  { %v382_v59 = vpop.f32.mrf.mxu2  ;;  %v401_v60 = vpop.f32.mrf.mxu3 }
 0x13b   :  { %v3895_v61 = vadd.f32 %v382_v59, %v3810_v14  ;;  %v3898_v62 = vadd.f32 %v401_v60, %v3812_v15  ;;  %v347_v63 = vpop.f32.mrf.mxu0 }
 0x13c   :  { %v3903_v0 = vadd.f32 %v347_v63, %v3816_v16  ;;  %v368_v1 = vpop.f32.mrf.mxu1  ;;  %v3322_v63 = vld [vmem:[%s5221_s3 + $0x70] sm:$0xff] }
 0x13d   :  { %v3906_v2 = vadd.f32 %v368_v1, %v3820_v17  ;;  %3137 = vmatmul.msk.bf16.gmra.mxu0 %vm209_vm2, %v3319_v49 }
 0x13f   :  { %3141 = vmatmul.msk.bf16.gmra.mxu2 %vm209_vm2, %v3319_v49  ;;  %3143 = vmatmul.msk.bf16.gmra.mxu3 %vm209_vm2, %v3319_v49 }
 0x142   :  { %v385_v3 = vpop.f32.mrf.mxu2  ;;  %v404_v4 = vpop.f32.mrf.mxu3 }
 0x143   :  { %v3916_v6 = vadd.f32 %v385_v3, %v3827_v18  ;;  %v3919_v7 = vadd.f32 %v404_v4, %v3829_v19  ;;  %v349_v8 = vpop.f32.mrf.mxu0  ;;  %v1238_v19 = vpop.permute.xlu1 %1237 }
 0x144   :  { %v3927_v11 = vadd.f32 %v349_v8, %v3833_v20  ;;  %v480_v12 = vpop.f32.mrf.mxu1  ;;  %v1243_v22 = vsel %vm1239_vm9, %v1236_v10, %v1238_v19 }
 0x145   :  { %v3930_v13 = vadd.f32 %v480_v12, %v3841_v24 }
 0x147   :  { %3154 = vmatmul.msk.bf16.vlgmr.msra.gmra.mxu1 %vm209_vm2, %v3320_v9 }
 0x14a   :  { %v387_v14 = vpop.f32.mrf.mxu2  ;;  %v406_v15 = vpop.f32.mrf.mxu3 }
 0x14b   :  { %v3938_v16 = vadd.f32 %v387_v14, %v3846_v25  ;;  %v3941_v17 = vadd.f32 %v406_v15, %v3848_v26  ;;  %v461_v18 = vpop.f32.mrf.mxu0  ;;  %v1234_v25 = vpop.permute.xlu2 %1233  ;;  %v1260_v26 = vsel %vm216_vm1, %v1243_v22, 0 }
 0x14c   :  { %v3946_v20 = vadd.f32 %v461_v18, %v3855_v30  ;;  %v482_v21 = vpop.f32.mrf.mxu1  ;;  %v1241_v28 = vsel %vm1239_vm9, %v1232_v23, %v1234_v25  ;;  %v1242_v29 = vsel %vm1239_vm9, %v1234_v25, %v1236_v10  ;;  %v1686_v22 = vpop.permute.xlu1 %1685 }
 0x14d   :  { %v3950_v24 = vadd.f32 %v482_v21, %v3857_v33  ;;  %3152 = vmatmul.msk.bf16.vlgmr.msra.gmra.mxu0 %vm209_vm2, %v3320_v9  ;;  %v1254_v30 = vsel %vm216_vm1, %v1241_v28, 0  ;;  %v1257_v31 = vsel %vm216_vm1, %v1242_v29, 0 }
 0x14e   :  { %1288 = vmatpush.bf16.msra.mxu1 %v1254_v30 }
 0x14f   :  { %3156 = vmatmul.msk.bf16.vlgmr.msra.gmra.mxu2 %vm209_vm2, %v3320_v9  ;;  %3158 = vmatmul.msk.bf16.vlgmr.msra.gmra.mxu3 %vm209_vm2, %v3320_v9 }
 0x150   :  { %1307 = vmatpush.bf16.msra.mxu2 %v1257_v31  ;;  %1326 = vmatpush.bf16.msra.mxu3 %v1260_v26  ;;  %v1690_v26 = vpop.permute.xlu0 %1689 }
 0x152   :  { %v518_v32 = vpop.f32.mrf.mxu3  ;;  %v499_v33 = vpop.f32.mrf.mxu2 }
 0x153   :  { %v531_v34 = vadd.f32 %v518_v32, %v3874_v46  ;;  %v530_v35 = vadd.f32 %v499_v33, %v3872_v45  ;;  %v463_v36 = vpop.f32.mrf.mxu0  ;;  %v1230_v42 = vpop.permute.xlu2 %1229 }
 0x154   :  { %v532_v38 = vadd.f32 %v463_v36, %v3882_v50  ;;  %v485_v39 = vpop.f32.mrf.mxu1  ;;  %v1240_v43 = vsel %vm1239_vm9, %v1230_v42, %v1232_v23 }
 0x155   :  { %v537_v40 = vadd.f32 %v485_v39, %v3885_v56  ;;  %v1251_v45 = vsel %vm216_vm1, %v1240_v43, 0  ;;  %v1682_v39 = vpop.permute.xlu1 %1681 }
 0x156   :  { %1269 = vmatpush.bf16.msra.mxu0 %v1251_v45 }
 0x157   :  { %3155 = vmatmul.msk.bf16.gmra.mxu1 %vm209_vm2, %v3321_v37 }
 0x15a   :  { %v501_v46 = vpop.f32.mrf.mxu2  ;;  %v520_v48 = vpop.f32.mrf.mxu3 }
 0x15b   :  { %v534_v49 = vadd.f32 %v501_v46, %v3895_v61  ;;  %v535_v50 = vadd.f32 %v520_v48, %v3898_v62  ;;  %v466_v52 = vpop.f32.mrf.mxu0  ;;  %v1688_v3 = vpop.permute.xlu2 %1687 }
 0x15c   :  { %v536_v53 = vadd.f32 %v466_v52, %v3903_v0  ;;  %v487_v56 = vpop.f32.mrf.mxu1  ;;  %v1693_v23 = vsel %vm204_vm0, %v1686_v22, %v1688_v3  ;;  %v1694_v29 = vsel %vm204_vm0, %v1688_v3, %v1690_v26  ;;  %v3500_v52 = vmov 0  }
 0x15d   :  { %v541_v57 = vadd.f32 %v487_v56, %v3906_v2  ;;  %3153 = vmatmul.msk.bf16.gmra.mxu0 %vm209_vm2, %v3321_v37  ;;  %v1702_v25 = vsel %vm216_vm1, %v1693_v23, 0  ;;  %v1705_v30 = vsel %vm216_vm1, %v1694_v29, 0  ;;  %3346 = vset.pattern.permute.xlu0 %v3500_v52  ;;  %v1878_v26 = vpop.permute.xlu1 %1877 }
 0x15e   :  { %3347 = vset.pattern.permute.xlu1 %v3500_v52  ;;  %3345 = vset.pattern.permute.xlu2 %v3500_v52 }
 0x15f   :  { %3157 = vmatmul.msk.bf16.gmra.mxu2 %vm209_vm2, %v3321_v37  ;;  %3159 = vmatmul.msk.bf16.gmra.mxu3 %vm209_vm2, %v3321_v37 }
 0x162   :  { %v523_v58 = vpop.f32.mrf.mxu3  ;;  %v504_v59 = vpop.f32.mrf.mxu2 }
 0x163   :  { %v3994_v60 = vadd.f32 %v523_v58, %v3919_v7  ;;  %v538_v61 = vadd.f32 %v504_v59, %v3916_v6  ;;  %v468_v62 = vpop.f32.mrf.mxu0  ;;  %v1684_v18 = vpop.permute.xlu2 %1683 }
 0x164   :  { %v4003_v0 = vadd.f32 %v468_v62, %v3927_v11  ;;  %v615_v1 = vpop.f32.mrf.mxu1 }
 0x165   :  { %v4006_v2 = vadd.f32 %v615_v1, %v3930_v13  ;;  %v153_v1 = vld [vmem:[%s5222_s4] sm:$0xff] }
 0x166   :  { %1356 = vperm.xlu2 %3345, %v153_v1  }
 0x167   :  { %3170 = vmatmul.msk.bf16.vlgmr.msrb.gmra.mxu1 %vm209_vm2, %v3322_v63 }
 0x16a   :  { %v525_v4 = vpop.f32.mrf.mxu3  ;;  %v506_v6 = vpop.f32.mrf.mxu2 }
 0x16b   :  { %v4014_v7 = vadd.f32 %v525_v4, %v3941_v17  ;;  %v4017_v8 = vadd.f32 %v506_v6, %v3938_v16  ;;  %v596_v9 = vpop.f32.mrf.mxu0  ;;  %v3323_v17 = vld [vmem:[%s5221_s3 + $0x78] sm:$0xff]  ;;  %v1880_v6 = vpop.permute.xlu2 %1879 }
 0x16c   :  { %v4022_v10 = vadd.f32 %v596_v9, %v3946_v20  ;;  %v617_v11 = vpop.f32.mrf.mxu1 }
 0x16d   :  { %v4025_v12 = vadd.f32 %v617_v11, %v3950_v24  ;;  %3168 = vmatmul.msk.bf16.vlgmr.msrb.gmra.mxu0 %vm209_vm2, %v3322_v63  ;;  %v1692_v24 = vsel %vm204_vm0, %v1684_v18, %v1686_v22 }
 0x16e   :  { %v1699_v28 = vsel %vm216_vm1, %v1692_v24, 0 }
 0x16f   :  { %3172 = vmatmul.msk.bf16.vlgmr.msrb.gmra.mxu2 %vm209_vm2, %v3322_v63  ;;  %3174 = vmatmul.msk.bf16.vlgmr.msrb.gmra.mxu3 %vm209_vm2, %v3322_v63 }
 0x170   :  { %1733 = vmatpush.bf16.msrb.mxu1 %v1699_v28  ;;  %1752 = vmatpush.bf16.msrb.mxu2 %v1702_v25 }
 0x171   :  { %1771 = vmatpush.bf16.msrb.mxu3 %v1705_v30 }
 0x172   :  { %v634_v47 = vpop.f32.mrf.mxu2  ;;  %v653_v13 = vpop.f32.mrf.mxu3 }
 0x173   :  { %v4030_v14 = vadd.f32 %v634_v47, %v530_v35  ;;  %v4032_v15 = vadd.f32 %v653_v13, %v531_v34  ;;  %v598_v16 = vpop.f32.mrf.mxu0  ;;  %v3325_v13 = vld [vmem:[%s5221_s3 + $0x88] sm:$0xff] }
 0x174   :  { %v4037_v19 = vadd.f32 %v598_v16, %v532_v38  ;;  %v620_v20 = vpop.f32.mrf.mxu1 }
 0x175   :  { %v4039_v21 = vadd.f32 %v620_v20, %v537_v40  ;;  %v1691_v40 = vsel %vm204_vm0, %v1682_v39, %v1684_v18  ;;  %v1876_v18 = vpop.permute.xlu0 %1875  ;;  %v4124_v20 = vpop.permute.xlu2 %1993 }
 0x176   :  { %v1696_v42 = vsel %vm216_vm1, %v1691_v40, 0 }
 0x177   :  { %3171 = vmatmul.msk.bf16.gmra.mxu1 %vm209_vm2, %v3323_v17  ;;  %1714 = vmatpush.bf16.msrb.mxu0 %v1696_v42 }
 0x17a   :  { %v636_v31 = vpop.f32.mrf.mxu2  ;;  %v655_v32 = vpop.f32.mrf.mxu3 }
 0x17b   :  { %v4048_v33 = vadd.f32 %v636_v31, %v534_v49  ;;  %v4050_v34 = vadd.f32 %v655_v32, %v535_v50  ;;  %v601_v35 = vpop.f32.mrf.mxu0  ;;  %v3324_v50 = vld [vmem:[%s5221_s3 + $0x80] sm:$0xff] }
 0x17c   :  { %v4052_v36 = vadd.f32 %v601_v35, %v536_v53  ;;  %v622_v37 = vpop.f32.mrf.mxu1  ;;  %v155_v53 = vld [vmem:[%s5222_s4 + $0x10] sm:$0xff] }
 0x17d   :  { %v4054_v38 = vadd.f32 %v622_v37, %v541_v57  ;;  %3169 = vmatmul.msk.bf16.gmra.mxu0 %vm209_vm2, %v3323_v17  ;;  %1366 = vperm.xlu0 %3346, %v155_v53   ;;  %v1872_v28 = vpop.permute.xlu0 %1871  ;;  %v4140_v29 = vpop.permute.xlu2 %1989 }
 0x17f   :  { %3173 = vmatmul.msk.bf16.gmra.mxu2 %vm209_vm2, %v3323_v17  ;;  %3175 = vmatmul.msk.bf16.gmra.mxu3 %vm209_vm2, %v3323_v17  ;;  %v1787_v17 = vsel %vm216_vm1, %v3792_v5, 0 }
 0x182   :  { %v639_v43 = vpop.f32.mrf.mxu2  ;;  %v658_v45 = vpop.f32.mrf.mxu3 }
 0x183   :  { %v4061_v46 = vadd.f32 %v639_v43, %v538_v61  ;;  %v4064_v48 = vadd.f32 %v658_v45, %v3994_v60  ;;  %v603_v49 = vpop.f32.mrf.mxu0 }
 0x184   :  { %v4073_v56 = vadd.f32 %v603_v49, %v4003_v0  ;;  %v750_v57 = vpop.f32.mrf.mxu1  ;;  %v156_v0 = vld [vmem:[%s5222_s4 + $0x18] sm:$0xff]  ;;  %v1883_v49 = vsel %vm429_vm3, %v1876_v18, %v1878_v26 }
 0x185   :  { %v799_v58 = vadd.f32 %v750_v57, %v4006_v2  ;;  %1371 = vperm.xlu1 %3347, %v156_v0   ;;  %v4155_v39 = vpop.permute.xlu0 %1995  ;;  %v4161_v43 = vpop.permute.xlu2 %2113 }
 0x187   :  { %3186 = vmatmul.msk.bf16.vlgmr.msra.gmra.mxu1 %vm209_vm2, %v3324_v50 }
 0x188   :  { %1821 = vmatpush.bf16.msra.mxu1 %v1787_v17 }
 0x18a   :  { %v641_v59 = vpop.f32.mrf.mxu2  ;;  %v660_v60 = vpop.f32.mrf.mxu3 }
 0x18b   :  { %v4078_v61 = vadd.f32 %v641_v59, %v4017_v8  ;;  %v4081_v62 = vadd.f32 %v660_v60, %v4014_v7  ;;  %v731_v63 = vpop.f32.mrf.mxu0  ;;  %v1790_v7 = vsel %vm216_vm1, %v3757_v41, 0  ;;  %v1793_v8 = vsel %vm216_vm1, %v3773_v55, 0  ;;  %v154_v41 = vld [vmem:[%s5222_s4 + $0x8] sm:$0xff] }
 0x18c   :  { %v4090_v2 = vadd.f32 %v731_v63, %v4022_v10  ;;  %v752_v3 = vpop.f32.mrf.mxu1  ;;  %1361 = vperm.xlu2 %3345, %v154_v41   ;;  %v1892_v63 = vsel %vm216_vm1, %v1883_v49, 0 }
 0x18d   :  { %v4093_v4 = vadd.f32 %v752_v3, %v4025_v12  ;;  %3184 = vmatmul.msk.bf16.vlgmr.msra.gmra.mxu0 %vm209_vm2, %v3324_v50  ;;  %v4187_v1 = vpop.permute.xlu2 %2109 }
 0x18f   :  { %3188 = vmatmul.msk.bf16.vlgmr.msra.gmra.mxu2 %vm209_vm2, %v3324_v50  ;;  %3190 = vmatmul.msk.bf16.vlgmr.msra.gmra.mxu3 %vm209_vm2, %v3324_v50  ;;  %v1884_v50 = vsel %vm429_vm3, %v1878_v26, %v1880_v6 }
 0x190   :  { %1840 = vmatpush.bf16.msra.mxu2 %v1790_v7  ;;  %1859 = vmatpush.bf16.msra.mxu3 %v1793_v8 }
 0x192   :  { %v769_v9 = vpop.f32.mrf.mxu2  ;;  %v788_v10 = vpop.f32.mrf.mxu3 }
 0x193   :  { %v4103_v11 = vadd.f32 %v769_v9, %v4030_v14  ;;  %v4106_v12 = vadd.f32 %v788_v10, %v4032_v15  ;;  %v733_v47 = vpop.f32.mrf.mxu0  ;;  %v1784_v15 = vsel %vm216_vm1, %v3771_v51, 0 }
 0x194   :  { %v4115_v55 = vadd.f32 %v733_v47, %v4037_v19  ;;  %v755_v16 = vpop.f32.mrf.mxu1  ;;  %1802 = vmatpush.bf16.msra.mxu0 %v1784_v15 }
 0x195   :  { %v4118_v14 = vadd.f32 %v755_v16, %v4039_v21  ;;  %v4216_v15 = vpop.permute.xlu2 %2233 }
 0x197   :  { %3187 = vmatmul.msk.bf16.gmra.mxu1 %vm209_vm2, %v3325_v13 }
 0x19a   :  { %v771_v19 = vpop.f32.mrf.mxu2  ;;  %v790_v22 = vpop.f32.mrf.mxu3 }
 0x19b   :  { %v4128_v23 = vadd.f32 %v771_v19, %v4048_v33  ;;  %v4131_v21 = vadd.f32 %v790_v22, %v4050_v34  ;;  %v736_v24 = vpop.f32.mrf.mxu0 }
 0x19c   :  { %v4134_v51 = vadd.f32 %v736_v24, %v4052_v36  ;;  %v757_v5 = vpop.f32.mrf.mxu1 }
 0x19d   :  { %v4137_v25 = vadd.f32 %v757_v5, %v4054_v38  ;;  %3185 = vmatmul.msk.bf16.gmra.mxu0 %vm209_vm2, %v3325_v13  ;;  %v1874_v38 = vpop.permute.xlu1 %1873 }
 0x19e   :  { %v1882_v40 = vsel %vm429_vm3, %v1874_v38, %v1876_v18  ;;  %v1881_v45 = vsel %vm429_vm3, %v1872_v28, %v1874_v38 }
 0x19f   :  { %3189 = vmatmul.msk.bf16.gmra.mxu2 %vm209_vm2, %v3325_v13  ;;  %3191 = vmatmul.msk.bf16.gmra.mxu3 %vm209_vm2, %v3325_v13  ;;  %v1889_v42 = vsel %vm216_vm1, %v1882_v40, 0  ;;  %v1886_v57 = vsel %vm216_vm1, %v1881_v45, 0 }
 0x1a2   :  { %v774_v30 = vpop.f32.mrf.mxu2  ;;  %v793_v31 = vpop.f32.mrf.mxu3 }
 0x1a3   :  { %v4145_v32 = vadd.f32 %v774_v30, %v4061_v46  ;;  %v4148_v33 = vadd.f32 %v793_v31, %v4064_v48  ;;  %v738_v34 = vpop.f32.mrf.mxu0 }
 0x1a4   :  { %v4151_v35 = vadd.f32 %v738_v34, %v4073_v56  ;;  %v885_v36 = vpop.f32.mrf.mxu1  ;;  %v2001_v34 = vsel %vm564_vm4, %v4124_v20, %v4155_v39 }
 0x1a5   :  { %v4153_v37 = vadd.f32 %v885_v36, %v799_v58  ;;  %v1998_v0 = vpop.permute.xlu1 %1997 }
 0x1a7   :  { %3226 = vmatmul.msk.bf16.vlgmr.msrb.gmra.mxu1 %vm209_vm2, %v3630_v27 }
 0x1a8   :  { %1923 = vmatpush.bf16.msrb.mxu1 %v1889_v42 }
 0x1aa   :  { %v776_v46 = vpop.f32.mrf.mxu2  ;;  %v795_v48 = vpop.f32.mrf.mxu3 }
 0x1ab   :  { %v4167_v52 = vadd.f32 %v776_v46, %v4078_v61  ;;  %v4170_v53 = vadd.f32 %v795_v48, %v4081_v62  ;;  %v866_v56 = vpop.f32.mrf.mxu0  ;;  %v1895_v61 = vsel %vm216_vm1, %v1884_v50, 0  ;;  %v1992_v62 = vpop.permute.xlu0 %1991  ;;  %v2010_v46 = vsel %vm216_vm1, %v2001_v34, 0 }
 0x1ac   :  { %v4174_v58 = vadd.f32 %v866_v56, %v4090_v2  ;;  %v887_v59 = vpop.f32.mrf.mxu1 }
 0x1ad   :  { %v4177_v60 = vadd.f32 %v887_v59, %v4093_v4  ;;  %3224 = vmatmul.msk.bf16.vlgmr.msrb.gmra.mxu0 %vm209_vm2, %v3630_v27 }
 0x1ae   :  { %1904 = vmatpush.bf16.msrb.mxu0 %v1886_v57 }
 0x1af   :  { %3228 = vmatmul.msk.bf16.vlgmr.msrb.gmra.mxu2 %vm209_vm2, %v3630_v27  ;;  %3230 = vmatmul.msk.bf16.vlgmr.msrb.gmra.mxu3 %vm209_vm2, %v3630_v27  ;;  %v4201_v27 = vpop.permute.xlu1 %2111 }
 0x1b0   :  { %1942 = vmatpush.bf16.msrb.mxu2 %v1892_v63  ;;  %1961 = vmatpush.bf16.msrb.mxu3 %v1895_v61  ;;  %v2119_v34 = vsel %vm699_vm5, %v4201_v27, %v4161_v43 }
 0x1b2   :  { %v904_v2 = vpop.f32.mrf.mxu2  ;;  %v923_v3 = vpop.f32.mrf.mxu3 }
 0x1b3   :  { %v4190_v4 = vadd.f32 %v904_v2, %v4103_v11  ;;  %v4193_v6 = vadd.f32 %v923_v3, %v4106_v12  ;;  %v868_v7 = vpop.f32.mrf.mxu0  ;;  %v4203_v47 = vpop.permute.xlu0 %2115 }
 0x1b4   :  { %v4196_v8 = vadd.f32 %v868_v7, %v4115_v55  ;;  %v890_v9 = vpop.f32.mrf.mxu1 }
 0x1b5   :  { %v4199_v10 = vadd.f32 %v890_v9, %v4118_v14 }
 0x1b7   :  { %3227 = vmatmul.msk.bf16.gmra.mxu1 %vm209_vm2, %v3657_v44  ;;  %v4223_v18 = vpop.permute.xlu1 %2107 }
 0x1ba   :  { %v906_v11 = vpop.f32.mrf.mxu2  ;;  %v925_v13 = vpop.f32.mrf.mxu3 }
 0x1bb   :  { %v4208_v12 = vadd.f32 %v906_v11, %v4128_v23  ;;  %v4211_v41 = vadd.f32 %v925_v13, %v4131_v21  ;;  %v871_v55 = vpop.f32.mrf.mxu0  ;;  %v4225_v19 = vpop.permute.xlu0 %2229  ;;  %v2000_v21 = vsel %vm564_vm4, %v1992_v62, %v4124_v20 }
 0x1bc   :  { %v4214_v16 = vadd.f32 %v871_v55, %v4134_v51  ;;  %v892_v14 = vpop.f32.mrf.mxu1 }
 0x1bd   :  { %v4219_v17 = vadd.f32 %v892_v14, %v4137_v25  ;;  %3225 = vmatmul.msk.bf16.gmra.mxu0 %vm209_vm2, %v3657_v44 }
 0x1bf   :  { %3229 = vmatmul.msk.bf16.gmra.mxu2 %vm209_vm2, %v3657_v44  ;;  %3231 = vmatmul.msk.bf16.gmra.mxu3 %vm209_vm2, %v3657_v44  ;;  %v2007_v44 = vsel %vm216_vm1, %v2000_v21, 0  ;;  %v4246_v30 = vpop.permute.xlu1 %2231 }
 0x1c2   :  { %v909_v22 = vpop.f32.mrf.mxu2  ;;  %v928_v23 = vpop.f32.mrf.mxu3 }
 0x1c3   :  { %v4234_v24 = vadd.f32 %v909_v22, %v4145_v32  ;;  %v4237_v51 = vadd.f32 %v928_v23, %v4148_v33  ;;  %v873_v5 = vpop.f32.mrf.mxu0  ;;  %v4248_v31 = vpop.permute.xlu0 %2225  ;;  %v1999_v33 = vsel %vm564_vm4, %v4140_v29, %v1992_v62  ;;  %v3477_v62 = vld [vmem:[%s5221_s3 + $0x8] sm:$0xff] }
 0x1c4   :  { %v4240_v25 = vadd.f32 %v873_v5, %v4151_v35  ;;  %v1020_v26 = vpop.f32.mrf.mxu1  ;;  %v4252_v32 = vpop.permute.xlu2 %2347  ;;  %v2004_v42 = vsel %vm216_vm1, %v1999_v33, 0  ;;  %v2117_v33 = vsel %vm699_vm5, %v4223_v18, %v4187_v1 }
 0x1c5   :  { %v4243_v28 = vadd.f32 %v1020_v26, %v4153_v37  ;;  %v2002_v37 = vsel %vm564_vm4, %v4155_v39, %v1998_v0  ;;  %v3476_v39 = vld [vmem:[%s5221_s3] sm:$0xff] }
 0x1c6   :  { %v2013_v48 = vsel %vm216_vm1, %v2002_v37, 0  ;;  %v2122_v37 = vsel %vm216_vm1, %v2117_v33, 0 }
 0x1c7   :  { %3234 = vmatmul.msk.bf16.vlgmr.msra.gmra.mxu1 %vm209_vm2, %v3676_v54  ;;  %v4278_v49 = vpop.permute.xlu1 %2227 }
 0x1c8   :  { %2041 = vmatpush.bf16.msra.mxu1 %v2007_v44  ;;  %v3478_v44 = vld [vmem:[%s5221_s3 + $0x20] sm:$0xff] }
 0x1ca   :  { %v911_v35 = vpop.f32.mrf.mxu2  ;;  %v930_v36 = vpop.f32.mrf.mxu3 }
 0x1cb   :  { %v4262_v38 = vadd.f32 %v911_v35, %v4167_v52  ;;  %v948_v54 = vadd.f32 %v930_v36, %v4170_v53  ;;  %v1001_v40 = vpop.f32.mrf.mxu0  ;;  %v4280_v50 = vpop.permute.xlu0 %2349 }
 0x1cc   :  { %v4267_v29 = vadd.f32 %v1001_v40, %v4174_v58  ;;  %v1022_v45 = vpop.f32.mrf.mxu1  ;;  %v4284_v52 = vpop.permute.xlu2 %2343 }
 0x1cd   :  { %v4271_v20 = vadd.f32 %v1022_v45, %v4177_v60  ;;  %3232 = vmatmul.msk.bf16.vlgmr.msra.gmra.mxu0 %vm209_vm2, %v3476_v39 }
 0x1ce   :  { %2022 = vmatpush.bf16.msra.mxu0 %v2004_v42 }
 0x1cf   :  { %3236 = vmatmul.msk.bf16.vlgmr.msra.gmra.mxu2 %vm209_vm2, %v3476_v39  ;;  %3238 = vmatmul.msk.bf16.vlgmr.msra.gmra.mxu3 %vm209_vm2, %v3476_v39  ;;  %v4297_v61 = vpop.permute.xlu1 %2351 }
 0x1d0   :  { %2060 = vmatpush.bf16.msra.mxu2 %v2010_v46  ;;  %2079 = vmatpush.bf16.msra.mxu3 %v2013_v48  ;;  %v3479_v48 = vld [vmem:[%s5221_s3 + $0x28] sm:$0xff] }
 0x1d2   :  { %v1039_v53 = vpop.f32.mrf.mxu2  ;;  %v1058_v56 = vpop.f32.mrf.mxu3 }
 0x1d3   :  { %v4287_v57 = vadd.f32 %v1039_v53, %v4190_v4  ;;  %v4290_v58 = vadd.f32 %v1058_v56, %v4193_v6  ;;  %v1003_v59 = vpop.f32.mrf.mxu0  ;;  %v4299_v0 = vpop.permute.xlu0 %2345 }
 0x1d4   :  { %v4293_v60 = vadd.f32 %v1003_v59, %v4196_v8  ;;  %v4295_v63 = vpop.f32.mrf.mxu1  ;;  %v2468_v9 = vpop.permute.xlu2 %2467 }
 0x1d7   :  { %3235 = vmatmul.msk.bf16.gmra.mxu1 %vm209_vm2, %v3477_v62  ;;  %v4317_v13 = vpop.permute.xlu1 %2465 }
 0x1d8   :  { %v4321_v14 = vsel %vm1104_vm8, %v4317_v13, %v2468_v9 }
 0x1da   :  { %v1041_v2 = vpop.f32.mrf.mxu2  ;;  %v1060_v3 = vpop.f32.mrf.mxu3 }
 0x1db   :  { %v4306_v4 = vadd.f32 %v1041_v2, %v4208_v12  ;;  %v4309_v6 = vadd.f32 %v1060_v3, %v4211_v41  ;;  %v4311_v7 = vpop.f32.mrf.mxu0  ;;  %v2470_v55 = vpop.permute.xlu0 %2469  ;;  %v2118_v41 = vsel %vm699_vm5, %v4187_v1, %v4201_v27  ;;  %v2128_v1 = vsel %vm216_vm1, %v2119_v34, 0 }
 0x1dc   :  { %v1027_v8 = vpop.f32.mrf.mxu1  ;;  %v4324_v12 = vsel %vm1104_vm8, %v2468_v9, %v2470_v55  ;;  %v2125_v26 = vsel %vm216_vm1, %v2118_v41, 0 }
 0x1dd   :  { %v4314_v11 = vadd.f32 %v1027_v8, %v4219_v17  ;;  %3233 = vmatmul.msk.bf16.gmra.mxu0 %vm209_vm2, %v3477_v62  ;;  %v2236_v8 = vsel %vm834_vm6, %v4278_v49, %v4225_v19 }
 0x1de   :  { %v2243_v34 = vsel %vm216_vm1, %v2236_v8, 0  ;;  %v2238_v8 = vsel %vm834_vm6, %v4246_v30, %v4216_v15 }
 0x1df   :  { %3237 = vmatmul.msk.bf16.gmra.mxu2 %vm209_vm2, %v3477_v62  ;;  %3239 = vmatmul.msk.bf16.gmra.mxu3 %vm209_vm2, %v3477_v62  ;;  %v4374_v53 = vpop.permute.xlu1 %2461 }
 0x1e2   :  { %v4331_v17 = vpop.f32.mrf.mxu2  ;;  %v4333_v22 = vpop.f32.mrf.mxu3 }
 0x1e3   :  { %v1008_v23 = vpop.f32.mrf.mxu0  ;;  %v2584_v3 = vpop.permute.xlu0 %2583 }
 0x1e4   :  { %v4336_v21 = vadd.f32 %v1008_v23, %v4240_v25  ;;  %v1155_v5 = vpop.f32.mrf.mxu1  ;;  %v2120_v25 = vsel %vm699_vm5, %v4161_v43, %v4203_v47  ;;  %v4364_v43 = vpop.permute.xlu2 %2463 }
 0x1e5   :  { %v2131_v18 = vsel %vm216_vm1, %v2120_v25, 0  ;;  %v1204_v41 = vadd.f32 %v1155_v5, %v4243_v28  ;;  %v3480_v28 = vld [vmem:[%s5221_s3 + $0x30] sm:$0xff]  ;;  %v2235_v5 = vsel %vm834_vm6, %v4248_v31, %v4278_v49 }
 0x1e7   :  { %3242 = vmatmul.msk.bf16.vlgmr.msrb.gmra.mxu1 %vm209_vm2, %v3478_v44 }
 0x1e8   :  { %2159 = vmatpush.bf16.msrb.mxu1 %v2125_v26  ;;  %v2586_v26 = vpop.permute.xlu1 %2585 }
 0x1ea   :  { %v4352_v35 = vpop.f32.mrf.mxu2  ;;  %v1065_v36 = vpop.f32.mrf.mxu3 }
 0x1eb   :  { %v4355_v40 = vadd.f32 %v1065_v36, %v948_v54  ;;  %v1136_v42 = vpop.f32.mrf.mxu0  ;;  %v4401_v36 = vsel %vm1239_vm9, %v2584_v3, %v2586_v26 }
 0x1ec   :  { %v4357_v45 = vpop.f32.mrf.mxu1  ;;  %v2588_v39 = vpop.permute.xlu2 %2587 }
 0x1ed   :  { %3240 = vmatmul.msk.bf16.vlgmr.msrb.gmra.mxu0 %vm209_vm2, %v3478_v44 }
 0x1ee   :  { %2140 = vmatpush.bf16.msrb.mxu0 %v2122_v37  ;;  %v4404_v37 = vsel %vm1239_vm9, %v2586_v26, %v2588_v39  ;;  %v2237_v39 = vsel %vm834_vm6, %v4225_v19, %v4246_v30  ;;  %v2249_v19 = vsel %vm216_vm1, %v2238_v8, 0 }
 0x1ef   :  { %3244 = vmatmul.msk.bf16.vlgmr.msrb.gmra.mxu2 %vm209_vm2, %v3478_v44  ;;  %3246 = vmatmul.msk.bf16.vlgmr.msrb.gmra.mxu3 %vm209_vm2, %v3478_v44  ;;  %5225 = vst [vmem:[#allocation4_spill] sm:$0xff] %v4404_v37 }
 0x1f0   :  { %2178 = vmatpush.bf16.msrb.mxu2 %v2128_v1  ;;  %2197 = vmatpush.bf16.msrb.mxu3 %v2131_v18  ;;  %v2582_v37 = vpop.permute.xlu1 %2581 }
 0x1f2   :  { %v1174_v27 = vpop.f32.mrf.mxu2  ;;  %v1193_v47 = vpop.f32.mrf.mxu3 }
 0x1f3   :  { %v4366_v54 = vpop.f32.mrf.mxu0 }
 0x1f4   :  { %v4368_v46 = vpop.f32.mrf.mxu1  ;;  %v4397_v33 = vpop.permute.xlu2 %1356 }
 0x1f7   :  { %3243 = vmatmul.msk.bf16.gmra.mxu1 %vm209_vm2, %v3479_v48 }
 0x1fa   :  { %v4376_v56 = vpop.f32.mrf.mxu2  ;;  %v4378_v59 = vpop.f32.mrf.mxu3 }
 0x1fb   :  { %v4380_v62 = vpop.f32.mrf.mxu0 }
 0x1fc   :  { %v4382_v2 = vpop.f32.mrf.mxu1 }
 0x1fd   :  { %3241 = vmatmul.msk.bf16.gmra.mxu0 %vm209_vm2, %v3479_v48 }
 0x1ff   :  { %3245 = vmatmul.msk.bf16.gmra.mxu2 %vm209_vm2, %v3479_v48  ;;  %3247 = vmatmul.msk.bf16.gmra.mxu3 %vm209_vm2, %v3479_v48  ;;  %v2580_v48 = vpop.permute.xlu0 %2579 }
 0x200   :  { %v4431_v30 = vsel %vm1239_vm9, %v2580_v48, %v2582_v37  ;;  %v1077_v48 = vadd.f32 %v4295_v63, %v4199_v10  ;;  %v2354_v10 = vsel %vm969_vm7, %v4299_v0, %v4252_v32 }
 0x202   :  { %v4390_v9 = vpop.f32.mrf.mxu2  ;;  %v4392_v55 = vpop.f32.mrf.mxu3 }
 0x203   :  { %v4395_v23 = vpop.f32.mrf.mxu0 }
 0x204   :  { %v1290_v44 = vpop.f32.mrf.mxu1 }
 0x205   :  { %v1339_v25 = vadd.f32 %v1290_v44, %v1204_v41  ;;  %v1203_v41 = vadd.f32 %v1136_v42, %v4267_v29  ;;  %v4434_v29 = vsel %vm1239_vm9, %v2582_v37, %v2584_v3  ;;  %v2355_v42 = vsel %vm969_vm7, %v4252_v32, %v4280_v50 }
 0x206   :  { %v1206_v3 = vadd.f32 %v1193_v47, %v4290_v58  ;;  %v2356_v37 = vsel %vm969_vm7, %v4280_v50, %v4297_v61  ;;  %v1208_v50 = vadd.f32 %v4357_v45, %v4271_v20  ;;  %v4460_v61 = vsel %vm216_vm1, %v2355_v42, 0  ;;  %v4482_v42 = vpop.permute.xlu2 %1361 }
 0x207   :  { %v1375_v1 = vadd.f32 %v4397_v33, %v1339_v25  ;;  %3250 = vmatmul.msk.bf16.vlgmr.msra.gmra.mxu1 %vm209_vm2, %v3480_v28  ;;  %v2240_v25 = vsel %vm216_vm1, %v2235_v5, 0  ;;  %v4466_v47 = vpop.permute.xlu0 %1366  ;;  %v1076_v20 = vadd.f32 %v4311_v7, %v4214_v16  ;;  %v1207_v45 = vadd.f32 %v4366_v54, %v4293_v60  ;;  %v3481_v16 = vld [vmem:[%s5221_s3 + $0x38] sm:$0xff] }
 0x208   :  { %2277 = vmatpush.bf16.msra.mxu1 %v2243_v34  ;;  %v1079_v7 = vadd.f32 %v4333_v22, %v4237_v51  ;;  %v4493_v54 = vadd.f32 %v4352_v35, %v4262_v38  ;;  %v1216_v51 = vadd.f32 %v4382_v2, %v4314_v11 }
 0x209   :  { %v3193_v18 = vmul.f32 -1.442695, %v1375_v1  ;;  %v2246_v1 = vsel %vm216_vm1, %v2237_v39, 0  ;;  %v1205_v39 = vadd.f32 %v1174_v27, %v4287_v57 }
 0x20a   :  { %v4421_v26 = vpop.f32.mrf.mxu2  ;;  %v4423_v44 = vpop.f32.mrf.mxu3 }
 0x20b   :  { %3348 = vpow2.f32 %v3193_v18  ;;  %v1271_v31 = vpop.f32.mrf.mxu0 }
 0x20c   :  { %v1338_v49 = vadd.f32 %v1271_v31, %v1203_v41  ;;  %v1292_v34 = vpop.f32.mrf.mxu1  ;;  %v1212_v31 = vadd.f32 %v4368_v46, %v1077_v48 }
 0x20d   :  { %3248 = vmatmul.msk.bf16.vlgmr.msra.gmra.mxu0 %vm209_vm2, %v3480_v28 }
 0x20e   :  { %v1374_v15 = vadd.f32 %v4397_v33, %v1338_v49  ;;  %2258 = vmatpush.bf16.msra.mxu0 %v2240_v25 }
 0x20f   :  { %3252 = vmatmul.msk.bf16.vlgmr.msra.gmra.mxu2 %vm209_vm2, %v3480_v28  ;;  %3254 = vmatmul.msk.bf16.vlgmr.msra.gmra.mxu3 %vm209_vm2, %v3480_v28  ;;  %v2353_v28 = vsel %vm969_vm7, %v4284_v52, %v4299_v0  ;;  %v4463_v52 = vsel %vm216_vm1, %v2356_v37, 0 }
 0x210   :  { %v3192_v5 = vmul.f32 -1.442695, %v1374_v15  ;;  %2296 = vmatpush.bf16.msra.mxu2 %v2246_v1  ;;  %2315 = vmatpush.bf16.msra.mxu3 %v2249_v19  ;;  %v4469_v46 = vsel %vm216_vm1, %v2353_v28, 0  ;;  %v4478_v1 = vsel %vm216_vm1, %v2354_v10, 0  ;;  %v1343_v19 = vadd.f32 %v1292_v34, %v1208_v50 }
 0x211   :  { %v3349_v18 = vpop.eup %3348  ;;  %v1078_v15 = vadd.f32 %v4331_v17, %v4234_v24  ;;  %v1209_v24 = vadd.f32 %v4376_v56, %v4306_v4  ;;  %v1210_v34 = vadd.f32 %v4378_v59, %v4309_v6  ;;  %v1211_v28 = vadd.f32 %v4380_v62, %v1076_v20 }
 0x212   :  { %v4451_v8 = vadd.f32 1.0, %v3349_v18  ;;  %3350 = vpow2.f32 %v3192_v5  ;;  %v1309_v41 = vpop.f32.mrf.mxu2  ;;  %v1328_v25 = vpop.f32.mrf.mxu3  ;;  %v1379_v38 = vadd.f32 %v4482_v42, %v1343_v19  ;;  %v4509_v6 = vadd.f32 %v4392_v55, %v1079_v7 }
 0x213   :  { %v1340_v57 = vadd.f32 %v1309_v41, %v1205_v39  ;;  %v1341_v58 = vadd.f32 %v1328_v25, %v1206_v3  ;;  %v1273_v63 = vpop.f32.mrf.mxu0  ;;  %v4506_v4 = vadd.f32 %v4390_v9, %v1078_v15  ;;  %v4519_v55 = vadd.f32 %v4395_v23, %v4336_v21 }
 0x214   :  { %3352 = vrcp.f32 %v4451_v8  ;;  %v1295_v27 = vpop.f32.mrf.mxu1  ;;  %v1342_v17 = vadd.f32 %v1273_v63, %v1207_v45  ;;  %v1430_v62 = vand.u32 2147483647, %v4451_v8  ;;  %v1432_v11 = vand.u32 2147483648, %v4451_v8 }
 0x215   :  { %v1376_v32 = vadd.f32 %v4397_v33, %v1340_v57  ;;  %v1377_v0 = vadd.f32 %v4397_v33, %v1341_v58  ;;  %v1347_v49 = vadd.f32 %v1295_v27, %v1212_v31  ;;  %vm1426_vm10 = vweird.f32 %v4451_v8 }
 0x216   :  { %v1378_v2 = vadd.f32 %v4482_v42, %v1342_v17  ;;  %vm4526_vm12 = vcmp.eq.f32.partialorder %v1430_v62, 8.507059e+37  ;;  %v1433_v21 = vor.u32 1.1754944e-38, %v1432_v11 }
 0x217   :  { %v3194_v5 = vmul.f32 -1.442695, %v1376_v32  ;;  %v3195_v18 = vmul.f32 -1.442695, %v1377_v0  ;;  %v1383_v48 = vadd.f32 %v4466_v47, %v1347_v49  ;;  %3251 = vmatmul.msk.bf16.gmra.mxu1 %vm209_vm2, %v3481_v16  ;;  %v4532_v49 = vpop.permute.xlu1 %1371 }
 0x218   :  { %v3351_v60 = vpop.eup %3350 }
 0x219   :  { %v4499_v39 = vadd.f32 1.0, %v3351_v60  ;;  %3354 = vpow2.f32 %v3194_v5  ;;  %v3197_v3 = vmul.f32 -1.442695, %v1383_v48 }
 0x21a   :  { %v3353_v37 = vpop.eup %3352  ;;  %3356 = vpow2.f32 %v3195_v18  ;;  %v1311_v22 = vpop.f32.mrf.mxu2 }
 0x21b   :  { %v1330_v35 = vpop.f32.mrf.mxu3  ;;  %v1422_v56 = vmul.f32 %v3353_v37, %v4451_v8  ;;  %3358 = vrcp.f32 %v4499_v39  ;;  %v1276_v59 = vpop.f32.mrf.mxu0  ;;  %v1344_v41 = vadd.f32 %v1311_v22, %v1209_v24  ;;  %vm1427_vm11 = vweird.f32 %v3353_v37 }
 0x21c   :  { %v1297_v25 = vpop.f32.mrf.mxu1  ;;  %3360 = vpow2.f32 %v3197_v3  ;;  %v1345_v9 = vadd.f32 %v1330_v35, %v1210_v34  ;;  %v1346_v10 = vadd.f32 %v1276_v59, %v1211_v28  ;;  %vm1428_vm13 = vmor %vm1426_vm10, %vm1427_vm11  ;;  %v1415_v18 = vand.u32 2147483647, %v4499_v39 }
 0x21d   :  { %v1423_v31 = vsub.f32 1.0, %v1422_v56  ;;  %3249 = vmatmul.msk.bf16.gmra.mxu0 %vm209_vm2, %v3481_v16  ;;  %3362 = vtanh.f32 %v1379_v38  ;;  %v1380_v57 = vadd.f32 %v4482_v42, %v1344_v41  ;;  %v1351_v27 = vadd.f32 %v1297_v25, %v1216_v51 }
 0x21e   :  { %v1382_v50 = vadd.f32 %v4466_v47, %v1346_v10  ;;  %3364 = vtanh.f32 %v1378_v2  ;;  %v1381_v15 = vadd.f32 %v4482_v42, %v1345_v9  ;;  %v1417_v48 = vand.u32 2147483648, %v4499_v39 }
 0x21f   :  { %v3355_v58 = vpop.eup %3354  ;;  %v1424_v63 = vmul.f32 %v3353_v37, %v1423_v31  ;;  %3253 = vmatmul.msk.bf16.gmra.mxu2 %vm209_vm2, %v3481_v16  ;;  %3255 = vmatmul.msk.bf16.gmra.mxu3 %vm209_vm2, %v3481_v16  ;;  %3366 = vtanh.f32 %v1380_v57  ;;  %v1387_v34 = vadd.f32 %v4532_v49, %v1351_v27  ;;  %vm1411_vm14 = vweird.f32 %v4499_v39 }
 0x220   :  { %v3357_v32 = vpop.eup %3356  ;;  %v4530_v23 = vadd.f32 1.0, %v3355_v58  ;;  %v3196_v17 = vmul.f32 -1.442695, %v1382_v50  ;;  %vm4567_vm0 = vcmp.eq.f32.partialorder %v1415_v18, 8.507059e+37 }
 0x221   :  { %v4534_v20 = vpop.eup %3358  ;;  %v1425_v45 = vadd.f32 %v3353_v37, %v1424_v63  ;;  %v4536_v19 = vadd.f32 1.0, %v3357_v32  ;;  %v3201_v10 = vmul.f32 -1.442695, %v1387_v34 }
 0x222   :  { %v1407_v5 = vmul.f32 %v4534_v20, %v4499_v39  ;;  %3368 = vrcp.f32 %v4530_v23  ;;  %v1314_v16 = vpop.f32.mrf.mxu2  ;;  %v3361_v7 = vpop.eup %3360  ;;  %v1447_v22 = vand.u32 2147483648, %v4530_v23  ;;  %v1445_v59 = vand.u32 2147483647, %v4530_v23 }
 0x223   :  { %v1333_v60 = vpop.f32.mrf.mxu3  ;;  %v1429_v24 = vsel %vm1428_vm13, %v3353_v37, %v1425_v45  ;;  %3370 = vrcp.f32 %v4536_v19  ;;  %v1278_v3 = vpop.f32.mrf.mxu0  ;;  %v4551_v38 = vadd.f32 1.0, %v3361_v7  ;;  %v1217_v37 = vadd.f32 %v4421_v26, %v4493_v54  ;;  %v3482_v54 = vld [vmem:[%s5221_s3 + $0x40] sm:$0xff] }
 0x224   :  { %v3363_v28 = vpop.eup %3362  ;;  %v1408_v51 = vsub.f32 1.0, %v1407_v5  ;;  %v1434_v8 = vsel %vm4526_vm12, %v1433_v21, %v1429_v24  ;;  %v4554_v35 = vpop.f32.mrf.mxu1  ;;  %3372 = vtanh.f32 %v1381_v15  ;;  %vm1412_vm15 = vweird.f32 %v4534_v20 }
 0x225   :  { %v4558_v56 = vmul.f32 %v3363_v28, %v1434_v8  ;;  %v3365_v62 = vpop.eup %3364  ;;  %3374 = vrcp.f32 %v4551_v38  ;;  %v1418_v26 = vor.u32 1.1754944e-38, %v1417_v48  ;;  %vm1441_vm3 = vweird.f32 %v4530_v23  ;;  %vm1413_vm5 = vmor %vm1411_vm14, %vm1412_vm15 }
 0x226   :  { %v1409_v11 = vmul.f32 %v4534_v20, %v1408_v51  ;;  %v4565_v2 = vpop.eup %3366  ;;  %3376 = vpow2.f32 %v3196_v17  ;;  %v1448_v9 = vor.u32 1.1754944e-38, %v1447_v22  ;;  %vm1456_vm4 = vweird.f32 %v4536_v19 }
 0x227   :  { %3258 = vmatmul.msk.bf16.vlgmr.msrb.gmra.mxu1 %vm209_vm2, %v3482_v54  ;;  %v1348_v57 = vadd.f32 %v1314_v16, %v4506_v4  ;;  %v1506_v50 = vand.u32 2147483647, %v4551_v38  ;;  %v1508_v27 = vand.u32 2147483648, %v4551_v38  ;;  %vm4592_vm6 = vcmp.eq.f32.partialorder %v1445_v59, 8.507059e+37 }
 0x228   :  { %v4576_v25 = vpop.eup %3368  ;;  %v1410_v31 = vadd.f32 %v4534_v20, %v1409_v11  ;;  %2395 = vmatpush.bf16.msrb.mxu1 %v4478_v1  ;;  %v1460_v1 = vand.u32 2147483647, %v4536_v19  ;;  %v1462_v21 = vand.u32 2147483648, %v4536_v19  ;;  %3378 = vpow2.f32 %v3201_v10 }
 0x229   :  { %v4582_v58 = vpop.eup %3370  ;;  %v1437_v63 = vmul.f32 %v4576_v25, %v4530_v23  ;;  %v1384_v48 = vadd.f32 %v4466_v47, %v1348_v57  ;;  %v1349_v16 = vadd.f32 %v1333_v60, %v4509_v6  ;;  %vm1442_vm7 = vweird.f32 %v4576_v25 }
 0x22a   :  { %v1452_v4 = vmul.f32 %v4582_v58, %v4536_v19  ;;  %v1414_v0 = vsel %vm1413_vm5, %v4534_v20, %v1410_v31  ;;  %v1316_v39 = vpop.f32.mrf.mxu2  ;;  %v3373_v15 = vpop.eup %3372  ;;  %vm1457_vm9 = vweird.f32 %v4582_v58  ;;  %v1350_v6 = vadd.f32 %v1278_v3, %v4519_v55  ;;  %vm1443_vm12 = vmor %vm1441_vm3, %vm1442_vm7 }
 0x22b   :  { %v4601_v45 = vpop.f32.mrf.mxu3  ;;  %v1438_v5 = vsub.f32 1.0, %v1437_v63  ;;  %v1419_v18 = vsel %vm4567_vm0, %v1418_v26, %v1414_v0  ;;  %v4607_v7 = vpop.f32.mrf.mxu0  ;;  %v3198_v22 = vmul.f32 -1.442695, %v1384_v48  ;;  %v1352_v11 = vadd.f32 %v1316_v39, %v1217_v37  ;;  %vm1458_vm13 = vmor %vm1456_vm4, %vm1457_vm9 }
 0x22c   :  { %v3375_v24 = vpop.eup %3374  ;;  %v1453_v17 = vsub.f32 1.0, %v1452_v4  ;;  %v4609_v20 = vmul.f32 %v3365_v62, %v1419_v18  ;;  %v4613_v34 = vpop.f32.mrf.mxu1  ;;  %v1385_v62 = vadd.f32 %v4466_v47, %v1349_v16  ;;  %vm4625_vm10 = vcmp.eq.f32.partialorder %v1460_v1, 8.507059e+37 }
 0x22d   :  { %v3377_v28 = vpop.eup %3376  ;;  %v1439_v51 = vmul.f32 %v4576_v25, %v1438_v5  ;;  %v1498_v8 = vmul.f32 %v3375_v24, %v4551_v38  ;;  %3256 = vmatmul.msk.bf16.vlgmr.msrb.gmra.mxu0 %vm209_vm2, %v3482_v54  ;;  %3380 = vpow2.f32 %v3198_v22  ;;  %vm1503_vm11 = vweird.f32 %v3375_v24 }
 0x22e   :  { %v1454_v60 = vmul.f32 %v4582_v58, %v1453_v17  ;;  %v4620_v59 = vadd.f32 1.0, %v3377_v28  ;;  %2376 = vmatpush.bf16.msrb.mxu0 %v4469_v46  ;;  %v3379_v55 = vpop.eup %3378  ;;  %v1463_v3 = vor.u32 1.1754944e-38, %v1462_v21  ;;  %v1386_v23 = vadd.f32 %v4532_v49, %v1350_v6 }
 0x22f   :  { %v1499_v41 = vsub.f32 1.0, %v1498_v8  ;;  %v1440_v26 = vadd.f32 %v4576_v25, %v1439_v51  ;;  %3260 = vmatmul.msk.bf16.vlgmr.msrb.gmra.mxu2 %vm209_vm2, %v3482_v54  ;;  %3262 = vmatmul.msk.bf16.vlgmr.msrb.gmra.mxu3 %vm209_vm2, %v3482_v54  ;;  %v4644_v54 = vadd.f32 1.0, %v3379_v55  ;;  %vm1502_vm14 = vweird.f32 %v4551_v38 }
 0x230   :  { %v1455_v46 = vadd.f32 %v4582_v58, %v1454_v60  ;;  %3382 = vrcp.f32 %v4620_v59  ;;  %2414 = vmatpush.bf16.msrb.mxu2 %v4460_v61  ;;  %2433 = vmatpush.bf16.msrb.mxu3 %v4463_v52  ;;  %v3199_v61 = vmul.f32 -1.442695, %v1385_v62  ;;  %v1388_v52 = vadd.f32 %v4532_v49, %v1352_v11  ;;  %vm1504_vm15 = vmor %vm1502_vm14, %vm1503_vm11 }
 0x231   :  { %v1500_v37 = vmul.f32 %v3375_v24, %v1499_v41  ;;  %v1444_v10 = vsel %vm1443_vm12, %v4576_v25, %v1440_v26  ;;  %3384 = vrcp.f32 %v4644_v54  ;;  %vm1507_vm0 = vcmp.eq.f32.partialorder %v1506_v50, 8.507059e+37 }
 0x232   :  { %v1449_v57 = vsel %vm4592_vm6, %v1448_v9, %v1444_v10  ;;  %v1459_v63 = vsel %vm1458_vm13, %v4582_v58, %v1455_v46  ;;  %v4651_v1 = vpop.f32.mrf.mxu2  ;;  %v1543_v9 = vld [vmem:[%s5220_s2 + $0x8] sm:$0xff]  ;;  %v1509_v58 = vor.u32 1.1754944e-38, %v1508_v27  ;;  %3386 = vpow2.f32 %v3199_v61 }
 0x233   :  { %v4653_v25 = vpop.f32.mrf.mxu3  ;;  %v1501_v4 = vadd.f32 %v3375_v24, %v1500_v37  ;;  %v4657_v19 = vmul.f32 %v4565_v2, %v1449_v57  ;;  %v1464_v0 = vsel %vm4625_vm10, %v1463_v3, %v1459_v63  ;;  %v4661_v32 = vpop.f32.mrf.mxu0  ;;  %v3200_v18 = vmul.f32 -1.442695, %v1386_v23 }
 0x234   :  { %v4669_v21 = vmul.f32 %v3373_v15, %v1464_v0  ;;  %v4672_v2 = vpop.f32.mrf.mxu1  ;;  %v3381_v39 = vpop.eup %3380  ;;  %v3202_v28 = vmul.f32 -1.442695, %v1388_v52  ;;  %v2472_v27 = vsel %vm1104_vm8, %v4364_v43, %v4317_v13  ;;  %v1491_v38 = vand.u32 2147483647, %v4620_v59 }
 0x235   :  { %v1505_v5 = vsel %vm1504_vm15, %v3375_v24, %v1501_v4  ;;  %v4676_v17 = vadd.f32 1.0, %v3381_v39  ;;  %v3483_v24 = vld [vmem:[%s5221_s3 + $0x48] sm:$0xff]  ;;  %v1493_v22 = vand.u32 2147483648, %v4620_v59  ;;  %v4693_v6 = vsel %vm216_vm1, %v2472_v27, 0 }
 0x236   :  { %v3383_v48 = vpop.eup %3382  ;;  %v1510_v16 = vsel %vm1507_vm0, %v1509_v58, %v1505_v5  ;;  %v4698_v60 = vsel %vm1104_vm8, %v4374_v53, %v4364_v43  ;;  %v1602_v62 = vand.u32 2147483647, %v4644_v54  ;;  %v1218_v26 = vadd.f32 %v4423_v44, %v4355_v40 }
 0x237   :  { %v1547_v15 = vmul.f32 %v1543_v9, %v1510_v16  ;;  %v1483_v51 = vmul.f32 %v3383_v48, %v4620_v59  ;;  %3259 = vmatmul.msk.bf16.gmra.mxu1 %vm209_vm2, %v3483_v24  ;;  %3388 = vrcp.f32 %v4676_v17  ;;  %v4690_v13 = vpop.eup %3384  ;;  %vm1488_vm3 = vweird.f32 %v3383_v48 }
 0x238   :  { %3390 = vpow2.f32 %v3200_v18  ;;  %v3387_v41 = vpop.eup %3386  ;;  %v1594_v43 = vmul.f32 %v4690_v13, %v4644_v54  ;;  %vm1487_vm8 = vweird.f32 %v4620_v59  ;;  %v1604_v55 = vand.u32 2147483648, %v4644_v54  ;;  %v1542_v59 = vld [vmem:[%s5220_s2] sm:$0xff] }
 0x239   :  { %v1559_v50 = vadd.f32 %v4558_v56, %v1547_v15  ;;  %v1484_v8 = vsub.f32 1.0, %v1483_v51  ;;  %3392 = vpow2.f32 %v3202_v28  ;;  %v4716_v46 = vadd.f32 1.0, %v3387_v41  ;;  %vm1489_vm5 = vmor %vm1487_vm8, %vm1488_vm3 }
 0x23a   :  { %v4701_v11 = vpop.f32.mrf.mxu2  ;;  %vm4720_vm4 = vcmp.eq.f32.partialorder %v1491_v38, 8.507059e+37  ;;  %v1494_v37 = vor.u32 1.1754944e-38, %v1493_v22  ;;  %v1595_v10 = vsub.f32 1.0, %v1594_v43  ;;  %vm1598_vm6 = vweird.f32 %v4644_v54 }
 0x23b   :  { %v4703_v56 = vpop.f32.mrf.mxu3  ;;  %1639 = vst [vmem:[%s5224_s6 + $0x8] sm:$0xff] %v1559_v50  ;;  %v1485_v31 = vmul.f32 %v3383_v48, %v1484_v8  ;;  %v4712_v53 = vpop.f32.mrf.mxu0  ;;  %3394 = vtanh.f32 %v1559_v50  ;;  %vm4731_vm7 = vcmp.eq.f32.partialorder %v1602_v62, 8.507059e+37  ;;  %v1353_v63 = vadd.f32 %v4601_v45, %v1218_v26 }
 0x23c   :  { %v4718_v3 = vpop.f32.mrf.mxu1  ;;  %3396 = vrcp.f32 %v4716_v46  ;;  %v1596_v4 = vmul.f32 %v4690_v13, %v1595_v10  ;;  %vm1599_vm9 = vweird.f32 %v4690_v13  ;;  %v1605_v39 = vor.u32 1.1754944e-38, %v1604_v55 }
 0x23d   :  { %v1486_v40 = vadd.f32 %v3383_v48, %v1485_v31  ;;  %3257 = vmatmul.msk.bf16.gmra.mxu0 %vm209_vm2, %v3483_v24  ;;  %v4725_v23 = vpop.eup %3388  ;;  %v1521_v45 = vand.u32 2147483647, %v4676_v17  ;;  %vm4753_vm10 = vmor %vm1598_vm6, %vm1599_vm9  ;;  %v1523_v51 = vand.u32 2147483648, %v4676_v17  ;;  %v4775_v26 = vsel %vm216_vm1, %v4321_v14, 0 }
 0x23e   :  { %v3391_v61 = vpop.eup %3390  ;;  %v1513_v0 = vmul.f32 %v4725_v23, %v4676_v17  ;;  %vm1518_vm11 = vweird.f32 %v4725_v23  ;;  %v4779_v31 = vsel %vm216_vm1, %v4324_v12, 0  ;;  %vm1517_vm12 = vweird.f32 %v4676_v17 }
 0x23f   :  { %v1490_v52 = vsel %vm1489_vm5, %v3383_v48, %v1486_v40  ;;  %3261 = vmatmul.msk.bf16.gmra.mxu2 %vm209_vm2, %v3483_v24  ;;  %3263 = vmatmul.msk.bf16.gmra.mxu3 %vm209_vm2, %v3483_v24  ;;  %v3393_v9 = vpop.eup %3392  ;;  %v4746_v5 = vadd.f32 1.0, %v3391_v61  ;;  %v1597_v48 = vadd.f32 %v4690_v13, %v1596_v4  ;;  %v1389_v24 = vadd.f32 %v4532_v49, %v1353_v63  ;;  %vm1519_vm13 = vmor %vm1517_vm12, %vm1518_vm11  ;;  %v3484_v63 = vld [vmem:[%s5221_s3 + $0x50] sm:$0xff] }
 0x240   :  { %v1495_v58 = vsel %vm4720_vm4, %v1494_v37, %v1490_v52  ;;  %v1514_v16 = vsub.f32 1.0, %v1513_v0  ;;  %v4749_v28 = vadd.f32 1.0, %v3393_v9  ;;  %v2476_v12 = vsel %vm216_vm1, %v4698_v60, 0  ;;  %v1544_v37 = vld [vmem:[%s5220_s2 + $0x10] sm:$0xff] }
 0x241   :  { %v1546_v18 = vmul.f32 %v1542_v59, %v1495_v58  ;;  %v3395_v27 = vpop.eup %3394  ;;  %3398 = vrcp.f32 %v4746_v5  ;;  %v1601_v54 = vsel %vm4753_vm10, %v4690_v13, %v1597_v48  ;;  %v1536_v13 = vand.u32 2147483647, %v4716_v46 }
 0x242   :  { %v4761_v38 = vpop.f32.mrf.mxu2  ;;  %v1515_v22 = vmul.f32 %v4725_v23, %v1514_v16  ;;  %3400 = vrcp.f32 %v4749_v28  ;;  %v3397_v41 = vpop.eup %3396  ;;  %v1524_v44 = vor.u32 1.1754944e-38, %v1523_v51  ;;  %v1538_v10 = vand.u32 2147483648, %v4716_v46 }
 0x243   :  { %v4763_v50 = vpop.f32.mrf.mxu3  ;;  %v1558_v8 = vadd.f32 %v4609_v20, %v1546_v18  ;;  %v4771_v62 = vpop.f32.mrf.mxu0  ;;  %v1606_v20 = vsel %vm4731_vm7, %v1605_v39, %v1601_v54  ;;  %v1528_v14 = vmul.f32 %v3397_v41, %v4716_v46  ;;  %v3203_v59 = vmul.f32 -1.442695, %v1389_v24  ;;  %v1545_v24 = vld [vmem:[%s5220_s2 + $0x18] sm:$0xff] }
 0x244   :  { %v1823_v43 = vpop.f32.mrf.mxu1  ;;  %v1647_v55 = vmul.f32 %v3395_v27, %v1606_v20  ;;  %v1516_v40 = vadd.f32 %v4725_v23, %v1515_v22  ;;  %vm1522_vm14 = vcmp.eq.f32.partialorder %v1521_v45, 8.507059e+37  ;;  %vm1532_vm15 = vweird.f32 %v4716_v46 }
 0x245   :  { %1638 = vst [vmem:[%s5224_s6] sm:$0xff] %v1558_v8  ;;  %v1529_v57 = vsub.f32 1.0, %v1528_v14  ;;  %v4803_v60 = vadd.f32 %v1823_v43, %v4554_v35  ;;  %vm4810_vm0 = vcmp.eq.f32.partialorder %v1536_v13, 8.507059e+37  ;;  %3402 = vpow2.f32 %v3203_v59 }
 0x246   :  { %1651 = vst [vmem:[%s5223_s5 + $0x8] sm:$0xff] %v1647_v55  ;;  %v1520_v17 = vsel %vm1519_vm13, %v4725_v23, %v1516_v40  ;;  %vm1533_vm3 = vweird.f32 %v3397_v41  ;;  %3404 = vtanh.f32 %v1558_v8  ;;  %v1539_v58 = vor.u32 1.1754944e-38, %v1538_v10 }
 0x247   :  { %3266 = vmatmul.msk.bf16.vlgmr.msra.gmra.mxu1 %vm209_vm2, %v3484_v63  ;;  %v3399_v61 = vpop.eup %3398  ;;  %v1525_v52 = vsel %vm1522_vm14, %v1524_v44, %v1520_v17  ;;  %v1530_v0 = vmul.f32 %v3397_v41, %v1529_v57  ;;  %v1587_v39 = vand.u32 2147483647, %v4746_v5  ;;  %v1589_v15 = vand.u32 2147483648, %v4746_v5  ;;  %vm1534_vm8 = vmor %vm1532_vm15, %vm1533_vm3 }
 0x248   :  { %2513 = vmatpush.bf16.msra.mxu1 %v4693_v6  ;;  %v4815_v23 = vpop.eup %3400  ;;  %v1548_v35 = vmul.f32 %v1544_v37, %v1525_v52  ;;  %v1579_v9 = vmul.f32 %v3399_v61, %v4746_v5  ;;  %vm1584_vm4 = vweird.f32 %v3399_v61  ;;  %v1619_v54 = vand.u32 2147483648, %v4749_v28 }
 0x249   :  { %v1609_v45 = vmul.f32 %v4815_v23, %v4749_v28  ;;  %v1531_v16 = vadd.f32 %v3397_v41, %v1530_v0  ;;  %vm1614_vm5 = vweird.f32 %v4815_v23  ;;  %v1617_v40 = vand.u32 2147483647, %v4749_v28 }
 0x24a   :  { %v4821_v18 = vpop.f32.mrf.mxu2  ;;  %v1560_v6 = vadd.f32 %v4657_v19, %v1548_v35  ;;  %v1580_v27 = vsub.f32 1.0, %v1579_v9  ;;  %vm1583_vm6 = vweird.f32 %v4746_v5  ;;  %vm1588_vm9 = vcmp.eq.f32.partialorder %v1587_v39, 8.507059e+37 }
 0x24b   :  { %v4823_v48 = vpop.f32.mrf.mxu3  ;;  %v1804_v51 = vpop.f32.mrf.mxu0  ;;  %v1610_v8 = vsub.f32 1.0, %v1609_v45  ;;  %v1535_v20 = vsel %vm1534_vm8, %v3397_v41, %v1531_v16  ;;  %vm1585_vm7 = vmor %vm1583_vm6, %vm1584_vm4  ;;  %v1590_v37 = vor.u32 1.1754944e-38, %v1589_v15  ;;  %vm1613_vm10 = vweird.f32 %v4749_v28 }
 0x24c   :  { %v4834_v22 = vadd.f32 %v1804_v51, %v4607_v7  ;;  %v1825_v19 = vpop.f32.mrf.mxu1  ;;  %1640 = vst [vmem:[%s5224_s6 + $0x10] sm:$0xff] %v1560_v6  ;;  %3406 = vtanh.f32 %v1560_v6  ;;  %v1581_v46 = vmul.f32 %v3399_v61, %v1580_v27  ;;  %v3403_v43 = vpop.eup %3402  ;;  %v1540_v55 = vsel %vm4810_vm0, %v1539_v58, %v1535_v20  ;;  %vm1615_vm11 = vmor %vm1613_vm10, %vm1614_vm5 }
 0x24d   :  { %v4840_v13 = vadd.f32 %v1825_v19, %v4613_v34  ;;  %3264 = vmatmul.msk.bf16.vlgmr.msra.gmra.mxu0 %vm209_vm2, %v3484_v63  ;;  %v1611_v7 = vmul.f32 %v4815_v23, %v1610_v8  ;;  %v1549_v14 = vmul.f32 %v1545_v24, %v1540_v55  ;;  %v1577_v41 = vadd.f32 1.0, %v3403_v43  ;;  %v3405_v34 = vpop.eup %3404 }
 0x24e   :  { %2494 = vmatpush.bf16.msra.mxu0 %v2476_v12  ;;  %v1582_v44 = vadd.f32 %v3399_v61, %v1581_v46  ;;  %v1620_v59 = vor.u32 1.1754944e-38, %v1619_v54  ;;  %vm1618_vm12 = vcmp.eq.f32.partialorder %v1617_v40, 8.507059e+37 }
 0x24f   :  { %3268 = vmatmul.msk.bf16.vlgmr.msra.gmra.mxu2 %vm209_vm2, %v3484_v63  ;;  %3270 = vmatmul.msk.bf16.vlgmr.msra.gmra.mxu3 %vm209_vm2, %v3484_v63  ;;  %v1612_v10 = vadd.f32 %v4815_v23, %v1611_v7  ;;  %v1561_v5 = vadd.f32 %v4669_v21, %v1549_v14  ;;  %3408 = vrcp.f32 %v1577_v41  ;;  %v1634_v6 = vand.u32 2147483648, %v1577_v41 }
 0x250   :  { %2532 = vmatpush.bf16.msra.mxu2 %v4775_v26  ;;  %2551 = vmatpush.bf16.msra.mxu3 %v4779_v31  ;;  %v1586_v12 = vsel %vm1585_vm7, %v3399_v61, %v1582_v44  ;;  %v1632_v51 = vand.u32 2147483647, %v1577_v41  ;;  %vm1628_vm14 = vweird.f32 %v1577_v41 }
 0x251   :  { %v1591_v17 = vsel %vm1588_vm9, %v1590_v37, %v1586_v12  ;;  %v1616_v57 = vsel %vm1615_vm11, %v4815_v23, %v1612_v10  ;;  %1641 = vst [vmem:[%s5224_s6 + $0x18] sm:$0xff] %v1561_v5  ;;  %3410 = vtanh.f32 %v1561_v5  ;;  %v3486_v37 = vld [vmem:[%s5221_s3 + $0x60] sm:$0xff]  ;;  %v2594_v10 = vsel %vm216_vm1, %v4431_v30, 0 }
 0x252   :  { %v1842_v63 = vpop.f32.mrf.mxu2  ;;  %v3407_v4 = vpop.eup %3406  ;;  %v1646_v28 = vmul.f32 %v3405_v34, %v1591_v17  ;;  %v1621_v26 = vsel %vm1618_vm12, %v1620_v59, %v1616_v57  ;;  %vm1633_vm0 = vcmp.eq.f32.partialorder %v1632_v51, 8.507059e+37  ;;  %v2600_v59 = vsel %vm216_vm1, %v4401_v36, 0  ;;  %v5242_v17 = vld [vmem:[#allocation4_spill] sm:$0xff] }
 0x253   :  { %v1861_v52 = vpop.f32.mrf.mxu3  ;;  %v4864_v21 = vadd.f32 %v1842_v63, %v4651_v1  ;;  %v1806_v31 = vpop.f32.mrf.mxu0  ;;  %v1648_v61 = vmul.f32 %v3407_v4, %v1621_v26  ;;  %v2603_v57 = vsel %vm216_vm1, %v5242_v17, 0 }
 0x254   :  { %v4867_v35 = vadd.f32 %v1861_v52, %v4653_v25  ;;  %v1828_v0 = vpop.f32.mrf.mxu1  ;;  %1650 = vst [vmem:[%s5223_s5] sm:$0xff] %v1646_v28  ;;  %v4873_v23 = vadd.f32 %v1806_v31, %v4661_v32  ;;  %v3485_v25 = vld [vmem:[%s5221_s3 + $0x58] sm:$0xff]  ;;  %v3487_v28 = vld [vmem:[%s5221_s3 + $0x68] sm:$0xff] }
 0x255   :  { %v4876_v9 = vadd.f32 %v1828_v0, %v4672_v2  ;;  %1652 = vst [vmem:[%s5223_s5 + $0x10] sm:$0xff] %v1648_v61  ;;  %v3409_v1 = vpop.eup %3408 }
 0x256   :  { %v1624_v58 = vmul.f32 %v3409_v1, %v1577_v41  ;;  %vm1629_vm13 = vweird.f32 %v3409_v1  ;;  %v2597_v41 = vsel %vm216_vm1, %v4434_v29, 0 }
 0x257   :  { %3267 = vmatmul.msk.bf16.gmra.mxu1 %vm209_vm2, %v3485_v25  ;;  %v3411_v20 = vpop.eup %3410  ;;  %vm1630_vm15 = vmor %vm1628_vm14, %vm1629_vm13 }
 0x258   :  { %v1625_v39 = vsub.f32 1.0, %v1624_v58 }
 0x25a   :  { %v1844_v45 = vpop.f32.mrf.mxu2  ;;  %v1626_v15 = vmul.f32 %v3409_v1, %v1625_v39 }
 0x25b   :  { %v1863_v32 = vpop.f32.mrf.mxu3  ;;  %v4886_v2 = vadd.f32 %v1844_v45, %v4701_v11  ;;  %v1809_v27 = vpop.f32.mrf.mxu0  ;;  %v1635_v11 = vor.u32 1.1754944e-38, %v1634_v6 }
 0x25c   :  { %v4889_v16 = vadd.f32 %v1863_v32, %v4703_v56  ;;  %v1810_v24 = vadd.f32 %v1809_v27, %v4712_v53  ;;  %v1830_v8 = vpop.f32.mrf.mxu1  ;;  %v1627_v19 = vadd.f32 %v3409_v1, %v1626_v15 }
 0x25d   :  { %v1831_v54 = vadd.f32 %v1830_v8, %v4718_v3  ;;  %3265 = vmatmul.msk.bf16.gmra.mxu0 %vm209_vm2, %v3485_v25 }
 0x25e   :  { %v1631_v56 = vsel %vm1630_vm15, %v3409_v1, %v1627_v19 }
 0x25f   :  { %3269 = vmatmul.msk.bf16.gmra.mxu2 %vm209_vm2, %v3485_v25  ;;  %3271 = vmatmul.msk.bf16.gmra.mxu3 %vm209_vm2, %v3485_v25  ;;  %v1636_v46 = vsel %vm1633_vm0, %v1635_v11, %v1631_v56 }
 0x260   :  { %v1649_v43 = vmul.f32 %v3411_v20, %v1636_v46 }
 0x262   :  { %v1847_v55 = vpop.f32.mrf.mxu2  ;;  %1653 = vst [vmem:[%s5223_s5 + $0x18] sm:$0xff] %v1649_v43 }
 0x263   :  { %v1866_v53 = vpop.f32.mrf.mxu3  ;;  %v1848_v7 = vadd.f32 %v1847_v55, %v4761_v38  ;;  %v1811_v40 = vpop.f32.mrf.mxu0 }
 0x264   :  { %v1867_v3 = vadd.f32 %v1866_v53, %v4763_v50  ;;  %v1812_v14 = vadd.f32 %v1811_v40, %v4771_v62  ;;  %v1925_v44 = vpop.f32.mrf.mxu1  ;;  %v3489_v40 = vld [vmem:[%s5221_s3 + $0x78] sm:$0xff] }
 0x265   :  { %v1974_v34 = vadd.f32 %v1925_v44, %v4803_v60 }
 0x267   :  { %3274 = vmatmul.msk.bf16.vlgmr.msrb.gmra.mxu1 %vm209_vm2, %v3486_v37 }
 0x268   :  { %2631 = vmatpush.bf16.msrb.mxu1 %v2597_v41 }
 0x26a   :  { %v1849_v38 = vpop.f32.mrf.mxu2 }
 0x26b   :  { %v1868_v50 = vpop.f32.mrf.mxu3  ;;  %v1850_v62 = vadd.f32 %v1849_v38, %v4821_v18  ;;  %v1906_v12 = vpop.f32.mrf.mxu0 }
 0x26c   :  { %v1869_v5 = vadd.f32 %v1868_v50, %v4823_v48  ;;  %v1973_v29 = vadd.f32 %v1906_v12, %v4834_v22  ;;  %v1927_v60 = vpop.f32.mrf.mxu1 }
 0x26d   :  { %v1978_v63 = vadd.f32 %v1927_v60, %v4840_v13  ;;  %3272 = vmatmul.msk.bf16.vlgmr.msrb.gmra.mxu0 %vm209_vm2, %v3486_v37 }
 0x26e   :  { %2612 = vmatpush.bf16.msrb.mxu0 %v2594_v10 }
 0x26f   :  { %3276 = vmatmul.msk.bf16.vlgmr.msrb.gmra.mxu2 %vm209_vm2, %v3486_v37  ;;  %3278 = vmatmul.msk.bf16.vlgmr.msrb.gmra.mxu3 %vm209_vm2, %v3486_v37 }
 0x270   :  { %2650 = vmatpush.bf16.msrb.mxu2 %v2600_v59  ;;  %2669 = vmatpush.bf16.msrb.mxu3 %v2603_v57 }
 0x272   :  { %v1944_v30 = vpop.f32.mrf.mxu2 }
 0x273   :  { %v1963_v18 = vpop.f32.mrf.mxu3  ;;  %v1975_v48 = vadd.f32 %v1944_v30, %v4864_v21  ;;  %v1908_v22 = vpop.f32.mrf.mxu0 }
 0x274   :  { %v1976_v36 = vadd.f32 %v1963_v18, %v4867_v35  ;;  %v1977_v52 = vadd.f32 %v1908_v22, %v4873_v23  ;;  %v1930_v4 = vpop.f32.mrf.mxu1 }
 0x275   :  { %v1982_v13 = vadd.f32 %v1930_v4, %v4876_v9 }
 0x277   :  { %3275 = vmatmul.msk.bf16.gmra.mxu1 %vm209_vm2, %v3487_v28 }
 0x27a   :  { %v1946_v26 = vpop.f32.mrf.mxu2 }
 0x27b   :  { %v1965_v31 = vpop.f32.mrf.mxu3  ;;  %v1979_v61 = vadd.f32 %v1946_v26, %v4886_v2  ;;  %v1911_v0 = vpop.f32.mrf.mxu0 }
 0x27c   :  { %v1980_v21 = vadd.f32 %v1965_v31, %v4889_v16  ;;  %v1981_v35 = vadd.f32 %v1911_v0, %v1810_v24  ;;  %v1932_v1 = vpop.f32.mrf.mxu1  ;;  %v3488_v16 = vld [vmem:[%s5221_s3 + $0x70] sm:$0xff] }
 0x27d   :  { %v1986_v25 = vadd.f32 %v1932_v1, %v1831_v54  ;;  %3273 = vmatmul.msk.bf16.gmra.mxu0 %vm209_vm2, %v3487_v28 }
 0x27f   :  { %3277 = vmatmul.msk.bf16.gmra.mxu2 %vm209_vm2, %v3487_v28  ;;  %3279 = vmatmul.msk.bf16.gmra.mxu3 %vm209_vm2, %v3487_v28 }
 0x282   :  { %v1949_v23 = vpop.f32.mrf.mxu2 }
 0x283   :  { %v1968_v9 = vpop.f32.mrf.mxu3  ;;  %v1983_v58 = vadd.f32 %v1949_v23, %v1848_v7  ;;  %v1913_v45 = vpop.f32.mrf.mxu0 }
 0x284   :  { %v1984_v39 = vadd.f32 %v1968_v9, %v1867_v3  ;;  %v1985_v32 = vadd.f32 %v1913_v45, %v1812_v14  ;;  %v2043_v6 = vpop.f32.mrf.mxu1 }
 0x285   :  { %v2092_v2 = vadd.f32 %v2043_v6, %v1974_v34 }
 0x287   :  { %3282 = vmatmul.msk.bf16.vlgmr.msra.gmra.mxu1 %vm209_vm2, %v3488_v16 }
 0x28a   :  { %v1951_v27 = vpop.f32.mrf.mxu2 }
 0x28b   :  { %v1970_v15 = vpop.f32.mrf.mxu3  ;;  %v1987_v51 = vadd.f32 %v1951_v27, %v1850_v62  ;;  %v2024_v8 = vpop.f32.mrf.mxu0 }
 0x28c   :  { %v1988_v24 = vadd.f32 %v1970_v15, %v1869_v5  ;;  %v2091_v54 = vadd.f32 %v2024_v8, %v1973_v29  ;;  %v2045_v19 = vpop.f32.mrf.mxu1 }
 0x28d   :  { %v2096_v20 = vadd.f32 %v2045_v19, %v1978_v63  ;;  %3280 = vmatmul.msk.bf16.vlgmr.msra.gmra.mxu0 %vm209_vm2, %v3488_v16  ;;  %v3490_v63 = vld [vmem:[%s5221_s3 + $0x80] sm:$0xff] }
 0x28f   :  { %3284 = vmatmul.msk.bf16.vlgmr.msra.gmra.mxu2 %vm209_vm2, %v3488_v16  ;;  %3286 = vmatmul.msk.bf16.vlgmr.msra.gmra.mxu3 %vm209_vm2, %v3488_v16 }
 0x292   :  { %v2062_v11 = vpop.f32.mrf.mxu2 }
 0x293   :  { %v2081_v56 = vpop.f32.mrf.mxu3  ;;  %v2093_v46 = vadd.f32 %v2062_v11, %v1975_v48  ;;  %v2026_v55 = vpop.f32.mrf.mxu0 }
 0x294   :  { %v2094_v43 = vadd.f32 %v2081_v56, %v1976_v36  ;;  %v2095_v53 = vadd.f32 %v2026_v55, %v1977_v52  ;;  %v2048_v7 = vpop.f32.mrf.mxu1 }
 0x295   :  { %v2100_v3 = vadd.f32 %v2048_v7, %v1982_v13 }
 0x297   :  { %3283 = vmatmul.msk.bf16.gmra.mxu1 %vm209_vm2, %v3489_v40 }
 0x29a   :  { %v2064_v14 = vpop.f32.mrf.mxu2 }
 0x29b   :  { %v2083_v44 = vpop.f32.mrf.mxu3  ;;  %v2097_v41 = vadd.f32 %v2064_v14, %v1979_v61  ;;  %v2029_v37 = vpop.f32.mrf.mxu0 }
 0x29c   :  { %v2098_v34 = vadd.f32 %v2083_v44, %v1980_v21  ;;  %v2099_v38 = vadd.f32 %v2029_v37, %v1981_v35  ;;  %v2050_v50 = vpop.f32.mrf.mxu1 }
 0x29d   :  { %v2104_v10 = vadd.f32 %v2050_v50, %v1986_v25  ;;  %3281 = vmatmul.msk.bf16.gmra.mxu0 %vm209_vm2, %v3489_v40  ;;  %v3491_v25 = vld [vmem:[%s5221_s3 + $0x88] sm:$0xff] }
 0x29f   :  { %3285 = vmatmul.msk.bf16.gmra.mxu2 %vm209_vm2, %v3489_v40  ;;  %3287 = vmatmul.msk.bf16.gmra.mxu3 %vm209_vm2, %v3489_v40 }
 0x2a2   :  { %v2067_v62 = vpop.f32.mrf.mxu2 }
 0x2a3   :  { %v2086_v5 = vpop.f32.mrf.mxu3  ;;  %v2101_v12 = vadd.f32 %v2067_v62, %v1983_v58  ;;  %v2031_v60 = vpop.f32.mrf.mxu0 }
 0x2a4   :  { %v2102_v29 = vadd.f32 %v2086_v5, %v1984_v39  ;;  %v2103_v59 = vadd.f32 %v2031_v60, %v1985_v32  ;;  %v2161_v17 = vpop.f32.mrf.mxu1 }
 0x2a5   :  { %v2210_v57 = vadd.f32 %v2161_v17, %v2092_v2 }
 0x2a7   :  { %3290 = vmatmul.msk.bf16.vlgmr.msrb.gmra.mxu1 %vm209_vm2, %v3490_v63 }
 0x2aa   :  { %v2069_v30 = vpop.f32.mrf.mxu2 }
 0x2ab   :  { %v2088_v18 = vpop.f32.mrf.mxu3  ;;  %v2105_v48 = vadd.f32 %v2069_v30, %v1987_v51  ;;  %v2142_v22 = vpop.f32.mrf.mxu0 }
 0x2ac   :  { %v2106_v36 = vadd.f32 %v2088_v18, %v1988_v24  ;;  %v2209_v52 = vadd.f32 %v2142_v22, %v2091_v54  ;;  %v2163_v4 = vpop.f32.mrf.mxu1 }
 0x2ad   :  { %v2214_v13 = vadd.f32 %v2163_v4, %v2096_v20  ;;  %3288 = vmatmul.msk.bf16.vlgmr.msrb.gmra.mxu0 %vm209_vm2, %v3490_v63 }
 0x2af   :  { %3292 = vmatmul.msk.bf16.vlgmr.msrb.gmra.mxu2 %vm209_vm2, %v3490_v63  ;;  %3294 = vmatmul.msk.bf16.vlgmr.msrb.gmra.mxu3 %vm209_vm2, %v3490_v63 }
 0x2b2   :  { %v2180_v28 = vpop.f32.mrf.mxu2 }
 0x2b3   :  { %v2199_v26 = vpop.f32.mrf.mxu3  ;;  %v2211_v31 = vadd.f32 %v2180_v28, %v2093_v46  ;;  %v2144_v21 = vpop.f32.mrf.mxu0 }
 0x2b4   :  { %v2212_v61 = vadd.f32 %v2199_v26, %v2094_v43  ;;  %v2213_v0 = vadd.f32 %v2144_v21, %v2095_v53  ;;  %v2166_v35 = vpop.f32.mrf.mxu1 }
 0x2b5   :  { %v2218_v1 = vadd.f32 %v2166_v35, %v2100_v3 }
 0x2b7   :  { %3291 = vmatmul.msk.bf16.gmra.mxu1 %vm209_vm2, %v3491_v25 }
 0x2ba   :  { %v2182_v23 = vpop.f32.mrf.mxu2 }
 0x2bb   :  { %v2201_v9 = vpop.f32.mrf.mxu3  ;;  %v2215_v58 = vadd.f32 %v2182_v23, %v2097_v41  ;;  %v2147_v45 = vpop.f32.mrf.mxu0 }
 0x2bc   :  { %v2216_v39 = vadd.f32 %v2201_v9, %v2098_v34  ;;  %v2217_v32 = vadd.f32 %v2147_v45, %v2099_v38  ;;  %v2168_v6 = vpop.f32.mrf.mxu1 }
 0x2bd   :  { %v2222_v2 = vadd.f32 %v2168_v6, %v2104_v10  ;;  %3289 = vmatmul.msk.bf16.gmra.mxu0 %vm209_vm2, %v3491_v25 }
 0x2bf   :  { %3293 = vmatmul.msk.bf16.gmra.mxu2 %vm209_vm2, %v3491_v25  ;;  %3295 = vmatmul.msk.bf16.gmra.mxu3 %vm209_vm2, %v3491_v25 }
 0x2c2   :  { %v2185_v16 = vpop.f32.mrf.mxu2 }
 0x2c3   :  { %v2204_v27 = vpop.f32.mrf.mxu3  ;;  %v2219_v15 = vadd.f32 %v2185_v16, %v2101_v12  ;;  %v2149_v24 = vpop.f32.mrf.mxu0 }
 0x2c4   :  { %v2220_v51 = vadd.f32 %v2204_v27, %v2102_v29  ;;  %v2221_v8 = vadd.f32 %v2149_v24, %v2103_v59  ;;  %v2279_v54 = vpop.f32.mrf.mxu1 }
 0x2c5   :  { %v2328_v19 = vadd.f32 %v2279_v54, %v2210_v57 }
 0x2ca   :  { %v2187_v20 = vpop.f32.mrf.mxu2 }
 0x2cb   :  { %v2206_v11 = vpop.f32.mrf.mxu3  ;;  %v2223_v56 = vadd.f32 %v2187_v20, %v2105_v48  ;;  %v2260_v43 = vpop.f32.mrf.mxu0 }
 0x2cc   :  { %v2224_v46 = vadd.f32 %v2206_v11, %v2106_v36  ;;  %v2327_v55 = vadd.f32 %v2260_v43, %v2209_v52  ;;  %v2281_v53 = vpop.f32.mrf.mxu1 }
 0x2cd   :  { %v2332_v7 = vadd.f32 %v2281_v53, %v2214_v13 }
 0x2d2   :  { %v2298_v3 = vpop.f32.mrf.mxu2 }
 0x2d3   :  { %v2317_v40 = vpop.f32.mrf.mxu3  ;;  %v2329_v14 = vadd.f32 %v2298_v3, %v2211_v31  ;;  %v2262_v41 = vpop.f32.mrf.mxu0 }
 0x2d4   :  { %v2330_v44 = vadd.f32 %v2317_v40, %v2212_v61  ;;  %v2331_v34 = vadd.f32 %v2262_v41, %v2213_v0  ;;  %v2284_v37 = vpop.f32.mrf.mxu1 }
 0x2d5   :  { %v4963_v38 = vadd.f32 %v2284_v37, %v2218_v1 }
 0x2da   :  { %v2300_v50 = vpop.f32.mrf.mxu2 }
 0x2db   :  { %v2319_v10 = vpop.f32.mrf.mxu3  ;;  %v2333_v62 = vadd.f32 %v2300_v50, %v2215_v58  ;;  %v2265_v12 = vpop.f32.mrf.mxu0 }
 0x2dc   :  { %v2334_v5 = vadd.f32 %v2319_v10, %v2216_v39  ;;  %v4965_v29 = vadd.f32 %v2265_v12, %v2217_v32  ;;  %v2286_v60 = vpop.f32.mrf.mxu1 }
 0x2dd   :  { %v2340_v59 = vadd.f32 %v2286_v60, %v2222_v2 }
 0x2e2   :  { %v2303_v17 = vpop.f32.mrf.mxu2 }
 0x2e3   :  { %v2322_v57 = vpop.f32.mrf.mxu3  ;;  %v4967_v63 = vadd.f32 %v2303_v17, %v2219_v15  ;;  %v2267_v18 = vpop.f32.mrf.mxu0 }
 0x2e4   :  { %v4969_v30 = vadd.f32 %v2322_v57, %v2220_v51  ;;  %v2339_v48 = vadd.f32 %v2267_v18, %v2221_v8  ;;  %v2397_v36 = vpop.f32.mrf.mxu1 }
 0x2e5   :  { %v2446_v22 = vadd.f32 %v2397_v36, %v2328_v19 }
 0x2ea   :  { %v2305_v52 = vpop.f32.mrf.mxu2 }
 0x2eb   :  { %v2324_v4 = vpop.f32.mrf.mxu3  ;;  %v4971_v13 = vadd.f32 %v2305_v52, %v2223_v56  ;;  %v2378_v26 = vpop.f32.mrf.mxu0 }
 0x2ec   :  { %v2342_v28 = vadd.f32 %v2324_v4, %v2224_v46  ;;  %v2445_v31 = vadd.f32 %v2378_v26, %v2327_v55  ;;  %v2399_v61 = vpop.f32.mrf.mxu1 }
 0x2ed   :  { %v2450_v21 = vadd.f32 %v2399_v61, %v2332_v7 }
 0x2f2   :  { %v2416_v0 = vpop.f32.mrf.mxu2 }
 0x2f3   :  { %v2435_v35 = vpop.f32.mrf.mxu3  ;;  %v2447_v1 = vadd.f32 %v2416_v0, %v2329_v14  ;;  %v2380_v23 = vpop.f32.mrf.mxu0 }
 0x2f4   :  { %v2448_v25 = vadd.f32 %v2435_v35, %v2330_v44  ;;  %v4973_v9 = vadd.f32 %v2380_v23, %v2331_v34  ;;  %v2402_v58 = vpop.f32.mrf.mxu1 }
 0x2f5   :  { %v2454_v4 = vadd.f32 %v2402_v58, %v4963_v38 }
 0x2fa   :  { %v2418_v39 = vpop.f32.mrf.mxu2 }
 0x2fb   :  { %v2437_v45 = vpop.f32.mrf.mxu3  ;;  %v4975_v32 = vadd.f32 %v2418_v39, %v2333_v62  ;;  %v2383_v2 = vpop.f32.mrf.mxu0 }
 0x2fc   :  { %v4977_v6 = vadd.f32 %v2437_v45, %v2334_v5  ;;  %v2404_v16 = vpop.f32.mrf.mxu1 }
 0x2fd   :  { %v4979_v27 = vadd.f32 %v2404_v16, %v2340_v59 }
 0x302   :  { %v2421_v15 = vpop.f32.mrf.mxu2 }
 0x303   :  { %v2440_v51 = vpop.f32.mrf.mxu3  ;;  %v2385_v24 = vpop.f32.mrf.mxu0 }
 0x304   :  { %v4981_v8 = vadd.f32 %v2385_v24, %v2339_v48  ;;  %v2515_v54 = vpop.f32.mrf.mxu1 }
 0x305   :  { %v2564_v37 = vadd.f32 %v2515_v54, %v2446_v22 }
 0x30a   :  { %v2423_v19 = vpop.f32.mrf.mxu2 }
 0x30b   :  { %v2442_v20 = vpop.f32.mrf.mxu3  ;;  %v2496_v56 = vpop.f32.mrf.mxu0 }
 0x30c   :  { %v4983_v11 = vadd.f32 %v2442_v20, %v2342_v28  ;;  %v2517_v46 = vpop.f32.mrf.mxu1  ;;  %v2563_v60 = vadd.f32 %v2496_v56, %v2445_v31  ;;  %v2455_v56 = vadd.f32 %v2421_v15, %v4967_v63 }
 0x30d   :  { %v2568_v16 = vadd.f32 %v2517_v46, %v2450_v21  ;;  %v2456_v46 = vadd.f32 %v2440_v51, %v4969_v30 }
 0x312   :  { %v2534_v43 = vpop.f32.mrf.mxu2 }
 0x313   :  { %v2553_v55 = vpop.f32.mrf.mxu3  ;;  %v2498_v53 = vpop.f32.mrf.mxu0  ;;  %v2565_v28 = vadd.f32 %v2534_v43, %v2447_v1  ;;  %v2453_v1 = vadd.f32 %v2383_v2, %v4965_v29 }
 0x314   :  { %v2520_v7 = vpop.f32.mrf.mxu1  ;;  %v2566_v26 = vadd.f32 %v2553_v55, %v2448_v25  ;;  %v2567_v25 = vadd.f32 %v2498_v53, %v4973_v9 }
 0x315   :  { %v2572_v35 = vadd.f32 %v2520_v7, %v2454_v4 }
 0x31a   :  { %v2536_v3 = vpop.f32.mrf.mxu2 }
 0x31b   :  { %v2555_v40 = vpop.f32.mrf.mxu3  ;;  %v2501_v14 = vpop.f32.mrf.mxu0 }
 0x31c   :  { %v2522_v44 = vpop.f32.mrf.mxu1  ;;  %v2570_v29 = vadd.f32 %v2555_v40, %v4977_v6  ;;  %v2571_v15 = vadd.f32 %v2501_v14, %v2453_v1 }
 0x31d   :  { %v2576_v53 = vadd.f32 %v2522_v44, %v4979_v27 }
 0x322   :  { %v2539_v41 = vpop.f32.mrf.mxu2 }
 0x323   :  { %v2558_v34 = vpop.f32.mrf.mxu3  ;;  %v4985_v50 = vpop.f32.mrf.mxu0 }
 0x324   :  { %v2633_v10 = vpop.f32.mrf.mxu1 }
 0x325   :  { %v2682_v62 = vadd.f32 %v2633_v10, %v2564_v37  ;;  %v5005_v37 = vadd.f32 %v2423_v19, %v4971_v13  ;;  %v5013_v13 = vadd.f32 %v2539_v41, %v2455_v56  ;;  %v5015_v19 = vadd.f32 %v2558_v34, %v2456_v46 }
 0x326   :  { %v5024_v34 = vadd.f32 %v4985_v50, %v4981_v8 }
 0x327   :  { %v2698_v5 = vadd.f32 %v2682_v62, %v4397_v33 }
 0x329   :  { %v3297_v12 = vmul.f32 -1.442695, %v2698_v5 }
 0x32a   :  { %v4988_v59 = vpop.f32.mrf.mxu2 }
 0x32b   :  { %v4990_v17 = vpop.f32.mrf.mxu3  ;;  %3412 = vpow2.f32 %v3297_v12  ;;  %v2614_v57 = vpop.f32.mrf.mxu0 }
 0x32c   :  { %v2681_v18 = vadd.f32 %v2614_v57, %v2563_v60  ;;  %v2635_v48 = vpop.f32.mrf.mxu1 }
 0x32d   :  { %v2686_v58 = vadd.f32 %v2635_v48, %v2568_v16 }
 0x32e   :  { %v2697_v36 = vadd.f32 %v2681_v18, %v4397_v33 }
 0x32f   :  { %v2702_v62 = vadd.f32 %v2686_v58, %v4482_v42 }
 0x330   :  { %v3296_v52 = vmul.f32 -1.442695, %v2697_v36 }
 0x331   :  { %v3413_v22 = vpop.eup %3412 }
 0x332   :  { %v4994_v61 = vadd.f32 1.0, %v3413_v22  ;;  %3414 = vpow2.f32 %v3296_v52  ;;  %v2652_v31 = vpop.f32.mrf.mxu2 }
 0x333   :  { %v2671_v0 = vpop.f32.mrf.mxu3  ;;  %v2683_v23 = vadd.f32 %v2652_v31, %v2565_v28  ;;  %v2616_v45 = vpop.f32.mrf.mxu0 }
 0x334   :  { %v2684_v39 = vadd.f32 %v2671_v0, %v2566_v26  ;;  %3416 = vrcp.f32 %v4994_v61  ;;  %v2638_v24 = vpop.f32.mrf.mxu1  ;;  %v2685_v10 = vadd.f32 %v2616_v45, %v2567_v25  ;;  %v2755_v40 = vand.u32 2147483648, %v4994_v61 }
 0x335   :  { %v2699_v54 = vadd.f32 %v2683_v23, %v4397_v33  ;;  %v2690_v38 = vadd.f32 %v2638_v24, %v2572_v35  ;;  %vm2749_vm1 = vweird.f32 %v4994_v61  ;;  %v2577_v25 = vadd.f32 %v4988_v59, %v5005_v37 }
 0x336   :  { %v2700_v20 = vadd.f32 %v2684_v39, %v4397_v33  ;;  %v2569_v33 = vadd.f32 %v2536_v3, %v4975_v32  ;;  %v2753_v3 = vand.u32 2147483647, %v4994_v61  ;;  %v2701_v27 = vadd.f32 %v2685_v10, %v4482_v42 }
 0x337   :  { %v3298_v43 = vmul.f32 -1.442695, %v2699_v54  ;;  %v2706_v7 = vadd.f32 %v2690_v38, %v4466_v47  ;;  %v2756_v4 = vor.u32 1.1754944e-38, %v2755_v40 }
 0x338   :  { %v3299_v55 = vmul.f32 -1.442695, %v2700_v20  ;;  %v3415_v21 = vpop.eup %3414  ;;  %vm5029_vm3 = vcmp.eq.f32.partialorder %v2753_v3, 8.507059e+37 }
 0x339   :  { %v5009_v2 = vadd.f32 1.0, %v3415_v21  ;;  %3418 = vpow2.f32 %v3298_v43  ;;  %v3301_v9 = vmul.f32 -1.442695, %v2706_v7 }
 0x33a   :  { %v3417_v63 = vpop.eup %3416  ;;  %3420 = vpow2.f32 %v3299_v55  ;;  %v2654_v30 = vpop.f32.mrf.mxu2 }
 0x33b   :  { %v2673_v51 = vpop.f32.mrf.mxu3  ;;  %v2745_v32 = vmul.f32 %v3417_v63, %v4994_v61  ;;  %3422 = vrcp.f32 %v5009_v2  ;;  %v2619_v6 = vpop.f32.mrf.mxu0  ;;  %v2687_v14 = vadd.f32 %v2654_v30, %v2569_v33  ;;  %vm2750_vm2 = vweird.f32 %v3417_v63 }
 0x33c   :  { %v2640_v44 = vpop.f32.mrf.mxu1  ;;  %3424 = vpow2.f32 %v3301_v9  ;;  %v2688_v12 = vadd.f32 %v2673_v51, %v2570_v29  ;;  %v2689_v41 = vadd.f32 %v2619_v6, %v2571_v15  ;;  %vm2751_vm8 = vmor %vm2749_vm1, %vm2750_vm2  ;;  %v2738_v35 = vand.u32 2147483647, %v5009_v2 }
 0x33d   :  { %v2746_v5 = vsub.f32 1.0, %v2745_v32  ;;  %3426 = vtanh.f32 %v2702_v62  ;;  %v2703_v60 = vadd.f32 %v2687_v14, %v4482_v42  ;;  %v2694_v36 = vadd.f32 %v2640_v44, %v2576_v53 }
 0x33e   :  { %v2705_v48 = vadd.f32 %v2689_v41, %v4466_v47  ;;  %3428 = vtanh.f32 %v2701_v27  ;;  %v2704_v31 = vadd.f32 %v2688_v12, %v4482_v42  ;;  %v2740_v23 = vand.u32 2147483648, %v5009_v2 }
 0x33f   :  { %v3419_v57 = vpop.eup %3418  ;;  %v2747_v18 = vmul.f32 %v3417_v63, %v2746_v5  ;;  %3430 = vtanh.f32 %v2703_v60  ;;  %v2710_v54 = vadd.f32 %v2694_v36, %v4532_v49  ;;  %vm2734_vm4 = vweird.f32 %v5009_v2 }
 0x340   :  { %v3421_v52 = vpop.eup %3420  ;;  %v5033_v28 = vadd.f32 1.0, %v3419_v57  ;;  %v3300_v24 = vmul.f32 -1.442695, %v2705_v48  ;;  %vm5060_vm6 = vcmp.eq.f32.partialorder %v2738_v35, 8.507059e+37  ;;  %v2741_v46 = vor.u32 1.1754944e-38, %v2740_v23 }
 0x341   :  { %v3423_v8 = vpop.eup %3422  ;;  %v2748_v50 = vadd.f32 %v3417_v63, %v2747_v18  ;;  %v5035_v26 = vadd.f32 1.0, %v3421_v52  ;;  %v3305_v10 = vmul.f32 -1.442695, %v2710_v54  ;;  %v2578_v30 = vadd.f32 %v4990_v17, %v4983_v11 }
 0x342   :  { %v2730_v0 = vmul.f32 %v3423_v8, %v5009_v2  ;;  %3432 = vrcp.f32 %v5033_v28  ;;  %v2657_v39 = vpop.f32.mrf.mxu2  ;;  %v3425_v45 = vpop.eup %3424  ;;  %v2770_v1 = vand.u32 2147483648, %v5033_v28  ;;  %v2768_v56 = vand.u32 2147483647, %v5033_v28 }
 0x343   :  { %v2752_v16 = vsel %vm2751_vm8, %v3417_v63, %v2748_v50  ;;  %3434 = vrcp.f32 %v5035_v26  ;;  %v3427_v42 = vpop.eup %3426  ;;  %v5048_v38 = vadd.f32 1.0, %v3425_v45  ;;  %vm2735_vm5 = vweird.f32 %v3423_v8  ;;  %v2676_v9 = vpop.f32.mrf.mxu3 }
 0x344   :  { %v2731_v20 = vsub.f32 1.0, %v2730_v0  ;;  %v2757_v61 = vsel %vm5029_vm3, %v2756_v4, %v2752_v16  ;;  %3436 = vtanh.f32 %v2704_v31  ;;  %v3429_v43 = vpop.eup %3428  ;;  %vm2764_vm7 = vweird.f32 %v5033_v28  ;;  %vm2736_vm10 = vmor %vm2734_vm4, %vm2735_vm5  ;;  %v2621_v3 = vpop.f32.mrf.mxu0 }
 0x345   :  { %v5053_v58 = vmul.f32 %v3427_v42, %v2757_v61  ;;  %3438 = vrcp.f32 %v5048_v38  ;;  %v5058_v7 = vpop.eup %3430  ;;  %v2771_v33 = vor.u32 1.1754944e-38, %v2770_v1  ;;  %vm2779_vm9 = vweird.f32 %v5035_v26 }
 0x346   :  { %v2732_v55 = vmul.f32 %v3423_v8, %v2731_v20  ;;  %3440 = vpow2.f32 %v3300_v24  ;;  %v2691_v29 = vadd.f32 %v2657_v39, %v5013_v13  ;;  %v2829_v53 = vand.u32 2147483647, %v5048_v38 }
 0x347   :  { %v2831_v62 = vand.u32 2147483648, %v5048_v38  ;;  %vm5073_vm11 = vcmp.eq.f32.partialorder %v2768_v56, 8.507059e+37  ;;  %v2783_v51 = vand.u32 2147483647, %v5035_v26  ;;  %v2785_v6 = vand.u32 2147483648, %v5035_v26 }
 0x348   :  { %v3433_v59 = vpop.eup %3432  ;;  %v2733_v37 = vadd.f32 %v3423_v8, %v2732_v55  ;;  %3442 = vpow2.f32 %v3305_v10  ;;  %v2707_v14 = vadd.f32 %v2691_v29, %v4466_v47  ;;  %v2692_v44 = vadd.f32 %v2676_v9, %v5015_v19 }
 0x349   :  { %v3435_v63 = vpop.eup %3434  ;;  %v2760_v15 = vmul.f32 %v3433_v59, %v5033_v28  ;;  %vm2765_vm12 = vweird.f32 %v3433_v59  ;;  %v2693_v52 = vadd.f32 %v2621_v3, %v5024_v34  ;;  %vm5091_vm14 = vcmp.eq.f32.partialorder %v2783_v51, 8.507059e+37 }
 0x34a   :  { %v2775_v13 = vmul.f32 %v3435_v63, %v5035_v26  ;;  %v2737_v32 = vsel %vm2736_vm10, %v3423_v8, %v2733_v37  ;;  %v3437_v40 = vpop.eup %3436  ;;  %v2659_v5 = vpop.f32.mrf.mxu2  ;;  %vm2780_vm13 = vweird.f32 %v3435_v63  ;;  %v3302_v36 = vmul.f32 -1.442695, %v2707_v14  ;;  %vm2766_vm0 = vmor %vm2764_vm7, %vm2765_vm12 }
 0x34b   :  { %v2761_v2 = vsub.f32 1.0, %v2760_v15  ;;  %v2742_v27 = vsel %vm5060_vm6, %v2741_v46, %v2737_v32  ;;  %v3439_v12 = vpop.eup %3438  ;;  %v2708_v8 = vadd.f32 %v2692_v44, %v4466_v47  ;;  %v2695_v19 = vadd.f32 %v2659_v5, %v2577_v25  ;;  %vm2781_vm1 = vmor %vm2779_vm9, %vm2780_vm13  ;;  %v2866_v25 = vld [vmem:[%s5220_s2 + $0x28] sm:$0xff] }
 0x34c   :  { %v2776_v41 = vsub.f32 1.0, %v2775_v13  ;;  %v5084_v60 = vmul.f32 %v3429_v43, %v2742_v27  ;;  %v3441_v57 = vpop.eup %3440  ;;  %v2821_v18 = vmul.f32 %v3439_v12, %v5048_v38  ;;  %3444 = vpow2.f32 %v3302_v36  ;;  %v2678_v13 = vpop.f32.mrf.mxu3  ;;  %v2865_v27 = vld [vmem:[%s5220_s2 + $0x20] sm:$0xff] }
 0x34d   :  { %v2762_v48 = vmul.f32 %v3433_v59, %v2761_v2  ;;  %v5088_v4 = vadd.f32 1.0, %v3441_v57  ;;  %vm2826_vm15 = vweird.f32 %v3439_v12  ;;  %v2786_v23 = vor.u32 1.1754944e-38, %v2785_v6 }
 0x34e   :  { %v2777_v22 = vmul.f32 %v3435_v63, %v2776_v41  ;;  %v2822_v50 = vsub.f32 1.0, %v2821_v18  ;;  %v3443_v35 = vpop.eup %3442  ;;  %v2709_v16 = vadd.f32 %v2693_v52, %v4532_v49  ;;  %v3303_v28 = vmul.f32 -1.442695, %v2708_v8 }
 0x34f   :  { %v2763_v31 = vadd.f32 %v3433_v59, %v2762_v48  ;;  %3446 = vrcp.f32 %v5088_v4  ;;  %v5102_v45 = vadd.f32 1.0, %v3443_v35  ;;  %v2711_v42 = vadd.f32 %v2695_v19, %v4532_v49 }
 0x350   :  { %v2778_v34 = vadd.f32 %v3435_v63, %v2777_v22  ;;  %v2823_v39 = vmul.f32 %v3439_v12, %v2822_v50  ;;  %vm2825_vm2 = vweird.f32 %v5048_v38  ;;  %v2832_v1 = vor.u32 1.1754944e-38, %v2831_v62 }
 0x351   :  { %v2767_v47 = vsel %vm2766_vm0, %v3433_v59, %v2763_v31  ;;  %vm2827_vm3 = vmor %vm2825_vm2, %vm2826_vm15  ;;  %3448 = vrcp.f32 %v5102_v45  ;;  %vm2830_vm8 = vcmp.eq.f32.partialorder %v2829_v53, 8.507059e+37  ;;  %v3304_v38 = vmul.f32 -1.442695, %v2709_v16 }
 0x352   :  { %v2772_v24 = vsel %vm5073_vm11, %v2771_v33, %v2767_v47  ;;  %v2782_v54 = vsel %vm2781_vm1, %v3435_v63, %v2778_v34  ;;  %v2824_v20 = vadd.f32 %v3439_v12, %v2823_v39  ;;  %v3445_v43 = vpop.eup %3444  ;;  %3450 = vpow2.f32 %v3303_v28 }
 0x353   :  { %v5110_v61 = vmul.f32 %v5058_v7, %v2772_v24  ;;  %v2787_v26 = vsel %vm5091_vm14, %v2786_v23, %v2782_v54  ;;  %v5121_v46 = vadd.f32 1.0, %v3445_v43  ;;  %v3306_v59 = vmul.f32 -1.442695, %v2711_v42  ;;  %v2867_v54 = vld [vmem:[%s5220_s2 + $0x30] sm:$0xff] }
 0x354   :  { %v5118_v56 = vmul.f32 %v3437_v40, %v2787_v26  ;;  %v2828_v55 = vsel %vm2827_vm3, %v3439_v12, %v2824_v20  ;;  %v2814_v10 = vand.u32 2147483647, %v5088_v4  ;;  %v2816_v63 = vand.u32 2147483648, %v5088_v4 }
 0x355   :  { %v3447_v7 = vpop.eup %3446  ;;  %v2833_v21 = vsel %vm2830_vm8, %v2832_v1, %v2828_v55  ;;  %3452 = vrcp.f32 %v5121_v46  ;;  %v2925_v53 = vand.u32 2147483647, %v5102_v45  ;;  %vm2810_vm5 = vweird.f32 %v5088_v4 }
 0x356   :  { %v2870_v37 = vmul.f32 %v2866_v25, %v2833_v21  ;;  %v2806_v33 = vmul.f32 %v3447_v7, %v5088_v4  ;;  %3454 = vpow2.f32 %v3304_v38  ;;  %vm2811_vm4 = vweird.f32 %v3447_v7 }
 0x357   :  { %v3449_v15 = vpop.eup %3448  ;;  %3456 = vpow2.f32 %v3306_v59  ;;  %v2927_v32 = vand.u32 2147483648, %v5102_v45  ;;  %vm5139_vm6 = vcmp.eq.f32.partialorder %v2814_v10, 8.507059e+37  ;;  %v2817_v11 = vor.u32 1.1754944e-38, %v2816_v63  ;;  %vm2812_vm7 = vmor %vm2810_vm5, %vm2811_vm4 }
 0x358   :  { %v2882_v29 = vadd.f32 %v5053_v58, %v2870_v37  ;;  %v2807_v9 = vsub.f32 1.0, %v2806_v33  ;;  %v3451_v62 = vpop.eup %3450  ;;  %v2917_v58 = vmul.f32 %v3449_v15, %v5102_v45  ;;  %vm2921_vm9 = vweird.f32 %v5102_v45 }
 0x359   :  { %v5137_v6 = vadd.f32 1.0, %v3451_v62  ;;  %vm5147_vm10 = vcmp.eq.f32.partialorder %v2925_v53, 8.507059e+37  ;;  %v2696_v44 = vadd.f32 %v2678_v13, %v2578_v30  ;;  %vm2922_vm11 = vweird.f32 %v3449_v15 }
 0x35a   :  { %2962 = vst [vmem:[%s5224_s6 + $0x28] sm:$0xff] %v2882_v29  ;;  %v2808_v51 = vmul.f32 %v3447_v7, %v2807_v9  ;;  %3458 = vtanh.f32 %v2882_v29  ;;  %v2918_v17 = vsub.f32 1.0, %v2917_v58  ;;  %v2928_v36 = vor.u32 1.1754944e-38, %v2927_v32  ;;  %vm2923_vm12 = vmor %vm2921_vm9, %vm2922_vm11  ;;  %v2868_v9 = vld [vmem:[%s5220_s2 + $0x38] sm:$0xff] }
 0x35b   :  { %v3453_v2 = vpop.eup %3452  ;;  %3460 = vrcp.f32 %v5137_v6  ;;  %v2844_v52 = vand.u32 2147483647, %v5121_v46  ;;  %v2846_v0 = vand.u32 2147483648, %v5121_v46  ;;  %v2712_v35 = vadd.f32 %v2696_v44, %v4532_v49 }
 0x35c   :  { %v2809_v3 = vadd.f32 %v3447_v7, %v2808_v51  ;;  %v3455_v5 = vpop.eup %3454  ;;  %v2919_v41 = vmul.f32 %v3449_v15, %v2918_v17  ;;  %v2836_v57 = vmul.f32 %v3453_v2, %v5121_v46  ;;  %vm2841_vm13 = vweird.f32 %v3453_v2 }
 0x35d   :  { %v3457_v18 = vpop.eup %3456  ;;  %v5156_v22 = vadd.f32 1.0, %v3455_v5  ;;  %vm2840_vm14 = vweird.f32 %v5121_v46  ;;  %v2859_v28 = vand.u32 2147483647, %v5137_v6  ;;  %v3307_v42 = vmul.f32 -1.442695, %v2712_v35 }
 0x35e   :  { %v2813_v12 = vsel %vm2812_vm7, %v3447_v7, %v2809_v3  ;;  %v2920_v8 = vadd.f32 %v3449_v15, %v2919_v41  ;;  %v2837_v19 = vsub.f32 1.0, %v2836_v57  ;;  %v5158_v50 = vadd.f32 1.0, %v3457_v18  ;;  %vm2842_vm15 = vmor %vm2840_vm14, %vm2841_vm13 }
 0x35f   :  { %v2818_v48 = vsel %vm5139_vm6, %v2817_v11, %v2813_v12  ;;  %3462 = vrcp.f32 %v5156_v22  ;;  %vm2845_vm0 = vcmp.eq.f32.partialorder %v2844_v52, 8.507059e+37  ;;  %v2861_v1 = vand.u32 2147483648, %v5137_v6 }
 0x360   :  { %v2869_v4 = vmul.f32 %v2865_v27, %v2818_v48  ;;  %v3459_v31 = vpop.eup %3458  ;;  %v2924_v23 = vsel %vm2923_vm12, %v3449_v15, %v2920_v8  ;;  %v2838_v39 = vmul.f32 %v3453_v2, %v2837_v19  ;;  %3464 = vrcp.f32 %v5158_v50 }
 0x361   :  { %v3461_v47 = vpop.eup %3460  ;;  %v2929_v16 = vsel %vm5147_vm10, %v2928_v36, %v2924_v23  ;;  %3466 = vpow2.f32 %v3307_v42  ;;  %vm2855_vm2 = vweird.f32 %v5137_v6  ;;  %vm5185_vm3 = vcmp.eq.f32.partialorder %v2859_v28, 8.507059e+37 }
 0x362   :  { %v2881_v34 = vadd.f32 %v5084_v60, %v2869_v4  ;;  %v2970_v45 = vmul.f32 %v3459_v31, %v2929_v16  ;;  %v2839_v24 = vadd.f32 %v3453_v2, %v2838_v39  ;;  %v2851_v49 = vmul.f32 %v3461_v47, %v5137_v6 }
 0x363   :  { %v2847_v60 = vor.u32 1.1754944e-38, %v2846_v0  ;;  %vm2856_vm1 = vweird.f32 %v3461_v47  ;;  %v2862_v10 = vor.u32 1.1754944e-38, %v2861_v1  ;;  %v2910_v63 = vand.u32 2147483647, %v5156_v22 }
 0x364   :  { %2961 = vst [vmem:[%s5224_s6 + $0x20] sm:$0xff] %v2881_v34  ;;  %v2843_v20 = vsel %vm2842_vm15, %v3453_v2, %v2839_v24  ;;  %v2852_v26 = vsub.f32 1.0, %v2851_v49  ;;  %3468 = vtanh.f32 %v2881_v34  ;;  %vm2857_vm8 = vmor %vm2855_vm2, %vm2856_vm1  ;;  %v2912_v15 = vand.u32 2147483648, %v5156_v22 }
 0x365   :  { %2974 = vst [vmem:[%s5223_s5 + $0x28] sm:$0xff] %v2970_v45  ;;  %v3463_v25 = vpop.eup %3462  ;;  %v2848_v43 = vsel %vm2845_vm0, %v2847_v60, %v2843_v20  ;;  %v2942_v62 = vand.u32 2147483648, %v5158_v50  ;;  %v2940_v32 = vand.u32 2147483647, %v5158_v50  ;;  %vm2906_vm6 = vweird.f32 %v5156_v22 }
 0x366   :  { %v3465_v55 = vpop.eup %3464  ;;  %v2871_v38 = vmul.f32 %v2867_v54, %v2848_v43  ;;  %v2853_v7 = vmul.f32 %v3461_v47, %v2852_v26  ;;  %v2902_v21 = vmul.f32 %v3463_v25, %v5156_v22  ;;  %vm2907_vm4 = vweird.f32 %v3463_v25 }
 0x367   :  { %v2932_v59 = vmul.f32 %v3465_v55, %v5158_v50  ;;  %v3467_v51 = vpop.eup %3466  ;;  %vm2937_vm5 = vweird.f32 %v3465_v55  ;;  %vm2908_vm7 = vmor %vm2906_vm6, %vm2907_vm4  ;;  %vm2911_vm9 = vcmp.eq.f32.partialorder %v2910_v63, 8.507059e+37  ;;  %v2913_v17 = vor.u32 1.1754944e-38, %v2912_v15 }
 0x368   :  { %v2883_v37 = vadd.f32 %v5110_v61, %v2871_v38  ;;  %v2854_v33 = vadd.f32 %v3461_v47, %v2853_v7  ;;  %v2903_v29 = vsub.f32 1.0, %v2902_v21  ;;  %v2900_v40 = vadd.f32 1.0, %v3467_v51 }
 0x369   :  { %v2933_v53 = vsub.f32 1.0, %v2932_v59  ;;  %vm2936_vm10 = vweird.f32 %v5158_v50  ;;  %v2943_v44 = vor.u32 1.1754944e-38, %v2942_v62  ;;  %vm2941_vm12 = vcmp.eq.f32.partialorder %v2940_v32, 8.507059e+37 }
 0x36a   :  { %2963 = vst [vmem:[%s5224_s6 + $0x30] sm:$0xff] %v2883_v37  ;;  %3470 = vtanh.f32 %v2883_v37  ;;  %v2858_v61 = vsel %vm2857_vm8, %v3461_v47, %v2854_v33  ;;  %v2904_v30 = vmul.f32 %v3463_v25, %v2903_v29  ;;  %v3469_v11 = vpop.eup %3468  ;;  %vm2938_vm11 = vmor %vm2936_vm10, %vm2937_vm5  ;;  %v2957_v22 = vand.u32 2147483648, %v2900_v40 }
 0x36b   :  { %v2863_v58 = vsel %vm5185_vm3, %v2862_v10, %v2858_v61  ;;  %v2934_v13 = vmul.f32 %v3465_v55, %v2933_v53  ;;  %3472 = vrcp.f32 %v2900_v40  ;;  %v2955_v8 = vand.u32 2147483647, %v2900_v40 }
 0x36c   :  { %v2872_v6 = vmul.f32 %v2868_v9, %v2863_v58  ;;  %v2905_v3 = vadd.f32 %v3463_v25, %v2904_v30  ;;  %vm2951_vm14 = vweird.f32 %v2900_v40  ;;  %v2958_v31 = vor.u32 1.1754944e-38, %v2957_v22 }
 0x36d   :  { %v2935_v2 = vadd.f32 %v3465_v55, %v2934_v13  ;;  %vm2956_vm0 = vcmp.eq.f32.partialorder %v2955_v8, 8.507059e+37 }
 0x36e   :  { %v2884_v27 = vadd.f32 %v5118_v56, %v2872_v6  ;;  %v2909_v14 = vsel %vm2908_vm7, %v3463_v25, %v2905_v3 }
 0x36f   :  { %v2914_v5 = vsel %vm2911_vm9, %v2913_v17, %v2909_v14  ;;  %v2939_v12 = vsel %vm2938_vm11, %v3465_v55, %v2935_v2 }
 0x370   :  { %v3471_v41 = vpop.eup %3470  ;;  %2964 = vst [vmem:[%s5224_s6 + $0x38] sm:$0xff] %v2884_v27  ;;  %v2969_v57 = vmul.f32 %v3469_v11, %v2914_v5  ;;  %v2944_v18 = vsel %vm2941_vm12, %v2943_v44, %v2939_v12  ;;  %3474 = vtanh.f32 %v2884_v27 }
 0x371   :  { %v2971_v48 = vmul.f32 %v3471_v41, %v2944_v18  ;;  %v3473_v56 = vpop.eup %3472 }
 0x372   :  { %2973 = vst [vmem:[%s5223_s5 + $0x20] sm:$0xff] %v2969_v57  ;;  %v2947_v36 = vmul.f32 %v3473_v56, %v2900_v40  ;;  %vm2952_vm13 = vweird.f32 %v3473_v56 }
 0x373   :  { %2975 = vst [vmem:[%s5223_s5 + $0x30] sm:$0xff] %v2971_v48  ;;  %vm2953_vm15 = vmor %vm2951_vm14, %vm2952_vm13 }
 0x374   :  { %v2948_v52 = vsub.f32 1.0, %v2947_v36 }
 0x376   :  { %v2949_v4 = vmul.f32 %v3473_v56, %v2948_v52  ;;  %v3475_v50 = vpop.eup %3474 }
 0x378   :  { %v2950_v19 = vadd.f32 %v3473_v56, %v2949_v4 }
 0x37a   :  { %v2954_v0 = vsel %vm2953_vm15, %v3473_v56, %v2950_v19 }
 0x37b   :  { %v2959_v35 = vsel %vm2956_vm0, %v2958_v31, %v2954_v0 }
 0x37c   :  { %v2972_v34 = vmul.f32 %v3475_v50, %v2959_v35 }
 0x37e   :  { %2976 = vst [vmem:[%s5223_s5 + $0x38] sm:$0xff] %v2972_v34 }

</bundles_post_ra>
